<compile_context>
chip_gen: v7x
topology: tpu7x:2x2x1
jax: 0.10.0
libtpu: 0.0.40
codegen_flags: <defaults>
</compile_context>

<pallas_src>
import functools

import jax
import jax.numpy as jnp
from jax.experimental import pallas as pl
from jax.experimental.pallas import tpu as pltpu

HIDDEN = 768          # hard-coded in the PyTorch module (x.reshape(-1, 768))
COS_EPS = 1e-8        # nn.CosineSimilarity default eps


def _round_up(a, m):
    return ((a + m - 1) // m) * m


def _choose_tiles(n, tile_anchor, tile_other):
    """Pick rectangular tiles (T_a, T_o) and a padded length serving both."""
    n128 = _round_up(n, 128)
    t_o = min(int(tile_other), n128)
    t_a = min(int(tile_anchor), n128)
    if t_a < t_o:
        t_o = t_a
    t_a = _round_up(t_a, t_o)          # ensure T_o | T_a
    n_pad = _round_up(n, t_a)          # multiple of both T_a and T_o
    return t_a, t_o, n_pad


def _contrastive_kernel(op_row_ref, op_col_ref, xat_ref, xo_ref,
                        lse_ref, psum_ref,
                        m_ref, l_ref, ps_ref, *, t_a, t_o):
    """One (anchor-tile gi, other-tile gj) step of the online reduction.

      op_row_ref: (1, T_a)  int32   anchor labels (lanes)
      op_col_ref: (T_o, 1)  int32   "other" labels (-1 == pad)
      xat_ref:    (768, T_a) bf16   pre-normalized anchors^T, 1/temp folded in
      xo_ref:     (T_o, 768) bf16   pre-normalized "other" features
      lse_ref:    (1, T_a)  f32     per-anchor logsumexp  (written at last gj)
      psum_ref:   (1, T_a)  f32     per-anchor positive sum (written at last gj)
      m/l/ps_ref: (1, T_a)  f32     running max / sum-exp / positive-sum scratch
    """
    gi = pl.program_id(0)
    gj = pl.program_id(1)

    @pl.when(gj == 0)
    def _init():
        m_ref[...] = jnp.full_like(m_ref, -jnp.inf)
        l_ref[...] = jnp.zeros_like(l_ref)
        ps_ref[...] = jnp.zeros_like(ps_ref)

    # Pairwise cosine/temp on the MXU: bf16 operands, f32 accumulation.
    #   s[o, a] = cos(x_other_o, x_anchor_a) / temp        -> (T_o, T_a)
    s = jnp.dot(xo_ref[...], xat_ref[...], preferred_element_type=jnp.float32)

    op_row = op_row_ref[...]                              # (1, T_a)
    op_col = op_col_ref[...]                              # (T_o, 1)
    valid = op_col >= 0                                   # non-padded "others"
    same = jnp.logical_and(valid, op_col == op_row)       # (T_o, T_a)

    def update(lse_mask, pos_mask):
        s_m = jnp.where(lse_mask, s, -jnp.inf)
        m_prev = m_ref[...]
        m_new = jnp.maximum(m_prev, jnp.max(s_m, axis=0, keepdims=True))
        alpha = jnp.exp(m_prev - m_new)
        l_ref[...] = l_ref[...] * alpha + jnp.sum(jnp.exp(s_m - m_new),
                                                  axis=0, keepdims=True)
        m_ref[...] = m_new
        ps_ref[...] += jnp.sum(jnp.where(pos_mask, s, 0.0),
                               axis=0, keepdims=True)

    # Only blocks the diagonal passes through pay for the self-exclusion mask.
    a_lo = gi * t_a
    o_lo = gj * t_o
    overlap = jnp.logical_and(o_lo < a_lo + t_a, a_lo < o_lo + t_o)

    @pl.when(overlap)
    def _overlap_block():
        o_idx = o_lo + jax.lax.broadcasted_iota(jnp.int32, (t_o, 1), 0)
        a_idx = a_lo + jax.lax.broadcasted_iota(jnp.int32, (1, t_a), 1)
        not_self = o_idx != a_idx                         # broadcast compare
        update(jnp.logical_and(valid, not_self),
               jnp.logical_and(same, not_self))

    @pl.when(jnp.logical_not(overlap))
    def _offdiag_block():
        update(valid, same)

    @pl.when(gj == pl.num_programs(1) - 1)
    def _finalize():
        lse_ref[...] = m_ref[...] + jnp.log(l_ref[...])
        psum_ref[...] = ps_ref[...]


def contrastive_loss(x, op_ids, n_op, temp=0.1,
                     tile_anchor=1024, tile_other=256):
    """JAX/Pallas equivalent of ContrastiveLoss.forward(x, op_ids, n_op)."""
    x = x.reshape(-1, HIDDEN).astype(jnp.float32)     # (N, 768)
    op_ids = op_ids.reshape(-1).astype(jnp.int32)     # (N,)
    n = x.shape[0]
    inv_temp = 1.0 / float(temp)

    t_a, t_o, n_pad = _choose_tiles(n, tile_anchor, tile_other)
    x_pad = jnp.pad(x, ((0, n_pad - n), (0, 0)))
    ids_pad = jnp.pad(op_ids, (0, n_pad - n), constant_values=-1)

    # Pre-normalize once in the wrapper (one fused XLA pass), fold 1/temp into
    # the anchor-side operand, cast to bf16, and pre-transpose the anchor side.
    norm = jnp.sqrt(jnp.sum(x_pad * x_pad, axis=-1, keepdims=True))
    xn = x_pad / jnp.maximum(norm, COS_EPS)
    xo_bf = xn.astype(jnp.bfloat16)                           # (N_pad, 768)
    xa_t = (xn * inv_temp).T.astype(jnp.bfloat16)             # (768, N_pad)

    op_row = ids_pad.reshape(1, n_pad)                # anchor labels (lanes)
    op_col = ids_pad.reshape(n_pad, 1)                # "other" labels (sublanes)

    lse, psum = pl.pallas_call(
        functools.partial(_contrastive_kernel, t_a=t_a, t_o=t_o),
        out_shape=(jax.ShapeDtypeStruct((1, n_pad), jnp.float32),
                   jax.ShapeDtypeStruct((1, n_pad), jnp.float32)),
        grid=(n_pad // t_a, n_pad // t_o),            # (anchor tiles, other tiles)
        in_specs=[
            pl.BlockSpec((1, t_a), lambda gi, gj: (0, gi)),        # anchor labels
            pl.BlockSpec((t_o, 1), lambda gi, gj: (gj, 0)),        # other labels
            pl.BlockSpec((HIDDEN, t_a), lambda gi, gj: (0, gi)),   # anchors^T bf16
            pl.BlockSpec((t_o, HIDDEN), lambda gi, gj: (gj, 0)),   # other feats bf16
        ],
        out_specs=(pl.BlockSpec((1, t_a), lambda gi, gj: (0, gi)),
                   pl.BlockSpec((1, t_a), lambda gi, gj: (0, gi))),
        scratch_shapes=[pltpu.VMEM((1, t_a), jnp.float32)] * 3,    # m, l, psum
        compiler_params=pltpu.CompilerParams(
            dimension_semantics=("parallel", "arbitrary")),        # megacore on gi
    )(op_row, op_col, xa_t, xo_bf)

    lse_n = lse[0, :n]                                # (N,)
    psum_n = psum[0, :n]                              # (N,)

    # Positive counts + per-label averaging (tiny plain-JAX glue).
    onehot = (op_ids[:, None] == jnp.arange(n_op, dtype=jnp.int32)[None, :])
    onehot = onehot.astype(jnp.float32)               # (N, n_op)
    label_counts = onehot.sum(axis=0)                 # (n_op,)
    pos_cnt = onehot @ label_counts - 1.0             # (N,) same-label count - 1
    per_anchor = jnp.where(pos_cnt > 0.0,
                           lse_n - psum_n / jnp.maximum(pos_cnt, 1.0), 0.0)
    sums = (per_anchor[:, None] * onehot).sum(axis=0)
    per_op = jnp.where(label_counts > 0.0,
                       sums / jnp.maximum(label_counts, 1.0), 0.0)
    return per_op.mean()


def _reference_loss(x, op_ids, n_op, temp):
    """Dense plain-JAX (f32) reference of the same math, for validation."""
    x = x.reshape(-1, HIDDEN).astype(jnp.float32)
    op_ids = op_ids.reshape(-1).astype(jnp.int32)
    n = x.shape[0]
    xn = x / jnp.maximum(jnp.linalg.norm(x, axis=-1, keepdims=True), COS_EPS)
    s = (xn @ xn.T) / temp
    eye = jnp.eye(n, dtype=bool)
    same = (op_ids[:, None] == op_ids[None, :]) & ~eye
    pos_cnt = same.sum(-1).astype(jnp.float32)
    pos_sum = jnp.where(same, s, 0.0).sum(-1)
    lse = jax.scipy.special.logsumexp(jnp.where(eye, -jnp.inf, s), axis=-1)
    per_anchor = jnp.where(pos_cnt > 0.0,
                           lse - pos_sum / jnp.maximum(pos_cnt, 1.0), 0.0)
    onehot = (op_ids[:, None] == jnp.arange(n_op)[None, :]).astype(jnp.float32)
    counts = onehot.sum(0)
    per_op = jnp.where(counts > 0.0,
                       (per_anchor[:, None] * onehot).sum(0)
                       / jnp.maximum(counts, 1.0), 0.0)
    return per_op.mean()


if __name__ == "__main__":
    key = jax.random.PRNGKey(0)
    k1, k2, k3 = jax.random.split(key, 3)

    # Case 1: small shapes consistent with the module (batch=2, slots=4,
    # hidden=768 — 768 is hard-coded by x.reshape(-1, 768)).  Single tile.
    x1 = jax.random.normal(k1, (2, 4, HIDDEN), dtype=jnp.float32)
    # label 0: 3 anchors, 1: 4 anchors, 2: singleton (NaN->0 branch), 3: empty.
    op1 = jnp.array([[0, 0, 1, 1],
                     [0, 2, 1, 1]], dtype=jnp.int32)
    loss1 = jax.block_until_ready(contrastive_loss(x1, op1, n_op=4, temp=0.1))
    ref1 = _reference_loss(x1, op1, 4, 0.1)
    assert loss1.shape == () and bool(jnp.isfinite(loss1))
    assert abs(float(loss1) - float(ref1)) < 0.1, (float(loss1), float(ref1))

    # Case 2: N=300 with rectangular tiles (T_a=256, T_o=128) -> 2x4 grid;
    # exercises the tiled online logsumexp, padding/validity masking, the
    # overlap-gated self-mask, and a fully-padded trailing "other" block.
    x2 = jax.random.normal(k2, (2, 150, HIDDEN), dtype=jnp.float32)
    op2 = jax.random.randint(k3, (2, 150), 0, 5, dtype=jnp.int32)
    op2 = op2.at[0, 0].set(5)          # label 5: singleton; label 6: empty
    loss2 = jax.block_until_ready(
        contrastive_loss(x2, op2, n_op=7, temp=0.1,
                         tile_anchor=256, tile_other=128))
    ref2 = _reference_loss(x2, op2, 7, 0.1)
    assert loss2.shape == () and bool(jnp.isfinite(loss2))
    assert abs(float(loss2) - float(ref2)) < 0.1, (float(loss2), float(ref2))

    print("KERNEL_OK")
</pallas_src>

<mosaic_0001>
module attributes {stable_mosaic.version = 11 : i64} {
  func.func @_contrastive_kernel(%arg0: i32, %arg1: i32, %arg2: memref<1x128xi32, #tpu.memory_space<vmem>>, %arg3: memref<128x1xi32, #tpu.memory_space<vmem>>, %arg4: memref<768x128xbf16, #tpu.memory_space<vmem>>, %arg5: memref<128x768xbf16, #tpu.memory_space<vmem>>, %arg6: memref<1x128xf32, #tpu.memory_space<vmem>>, %arg7: memref<1x128xf32, #tpu.memory_space<vmem>>, %arg8: memref<1x128xf32, #tpu.memory_space<vmem>>, %arg9: memref<1x128xf32, #tpu.memory_space<vmem>>, %arg10: memref<1x128xf32, #tpu.memory_space<vmem>>) attributes {dimension_semantics = [#tpu.dimension_semantics<parallel>, #tpu.dimension_semantics<arbitrary>], iteration_bounds = array<i64: 1, 1>, scalar_prefetch = 0 : i64, scratch_operands = 3 : i64, tpu.core_type = #tpu.core_type<tc>, window_params = [{transform_indices = @transform_0, window_bounds = array<i64: 1, 128>}, {transform_indices = @transform_1, window_bounds = array<i64: 128, 1>}, {transform_indices = @transform_2, window_bounds = array<i64: 768, 128>}, {transform_indices = @transform_3, window_bounds = array<i64: 128, 768>}, {transform_indices = @transform_4, window_bounds = array<i64: 1, 128>}, {transform_indices = @transform_5, window_bounds = array<i64: 1, 128>}]} {
    %c0_i32 = arith.constant 0 : i32
    %0 = arith.cmpi eq, %arg1, %c0_i32 : i32
    %1 = arith.extui %0 : i1 to i32
    %c0_i32_0 = arith.constant 0 : i32
    %2 = arith.cmpi ne, %1, %c0_i32_0 : i32
    scf.if %2 {
      %cst_16 = arith.constant 0xFF800000 : f32
      %30 = vector.broadcast %cst_16 : f32 to vector<1x128xf32>
      %c0_17 = arith.constant 0 : index
      %c0_18 = arith.constant 0 : index
      %31 = vector.load %arg8[%c0_17, %c0_18] : memref<1x128xf32, #tpu.memory_space<vmem>>, vector<1x128xf32>
      tpu.vector_store %arg8[%c0_17, %c0_18], %30 {strides = array<i32>} : memref<1x128xf32, #tpu.memory_space<vmem>>, vector<1x128xf32>,
      %cst_19 = arith.constant 0.000000e+00 : f32
      %32 = vector.broadcast %cst_19 : f32 to vector<1x128xf32>
      %c0_20 = arith.constant 0 : index
      %c0_21 = arith.constant 0 : index
      %33 = vector.load %arg9[%c0_20, %c0_21] : memref<1x128xf32, #tpu.memory_space<vmem>>, vector<1x128xf32>
      tpu.vector_store %arg9[%c0_20, %c0_21], %32 {strides = array<i32>} : memref<1x128xf32, #tpu.memory_space<vmem>>, vector<1x128xf32>,
      %cst_22 = arith.constant 0.000000e+00 : f32
      %34 = vector.broadcast %cst_22 : f32 to vector<1x128xf32>
      %c0_23 = arith.constant 0 : index
      %c0_24 = arith.constant 0 : index
      %35 = vector.load %arg10[%c0_23, %c0_24] : memref<1x128xf32, #tpu.memory_space<vmem>>, vector<1x128xf32>
      tpu.vector_store %arg10[%c0_23, %c0_24], %34 {strides = array<i32>} : memref<1x128xf32, #tpu.memory_space<vmem>>, vector<1x128xf32>,
    } else {
    }
    %c0 = arith.constant 0 : index
    %c0_1 = arith.constant 0 : index
    %3 = vector.load %arg5[%c0, %c0_1] : memref<128x768xbf16, #tpu.memory_space<vmem>>, vector<128x768xbf16>
    %c0_2 = arith.constant 0 : index
    %c0_3 = arith.constant 0 : index
    %4 = vector.load %arg4[%c0_2, %c0_3] : memref<768x128xbf16, #tpu.memory_space<vmem>>, vector<768x128xbf16>
    %cst = arith.constant dense<0.000000e+00> : vector<128x128xf32>
    %5 = tpu.matmul %3, %4, %cst {dimension_numbers = #tpu.dot_dimension_numbers<[1], [0], [0], [1], [0, 0, 1, 1], [], []>} : vector<128x768xbf16>, vector<768x128xbf16>, vector<128x128xf32> -> vector<128x128xf32>
    %c0_4 = arith.constant 0 : index
    %c0_5 = arith.constant 0 : index
    %6 = vector.load %arg2[%c0_4, %c0_5] : memref<1x128xi32, #tpu.memory_space<vmem>>, vector<1x128xi32>
    %c0_6 = arith.constant 0 : index
    %c0_7 = arith.constant 0 : index
    %7 = vector.load %arg3[%c0_6, %c0_7] : memref<128x1xi32, #tpu.memory_space<vmem>>, vector<128x1xi32>
    %c0_i32_8 = arith.constant 0 : i32
    %8 = vector.broadcast %c0_i32_8 : i32 to vector<128x1xi32>
    %9 = arith.cmpi sge, %7, %8 : vector<128x1xi32>
    %10 = vector.broadcast %7 : vector<128x1xi32> to vector<128x128xi32>
    %11 = vector.broadcast %6 : vector<1x128xi32> to vector<128x128xi32>
    %12 = arith.cmpi eq, %10, %11 : vector<128x128xi32>
    %13 = vector.broadcast %9 : vector<128x1xi1> to vector<128x128xi1>
    %14 = arith.andi %13, %12 : vector<128x128xi1>
    %c128_i32 = arith.constant 128 : i32
    %15 = arith.muli %arg0, %c128_i32 : i32
    %c128_i32_9 = arith.constant 128 : i32
    %16 = arith.muli %arg1, %c128_i32_9 : i32
    %c128_i32_10 = arith.constant 128 : i32
    %17 = arith.addi %15, %c128_i32_10 : i32
    %18 = arith.cmpi slt, %16, %17 : i32
    %c128_i32_11 = arith.constant 128 : i32
    %19 = arith.addi %16, %c128_i32_11 : i32
    %20 = arith.cmpi slt, %15, %19 : i32
    %21 = arith.andi %18, %20 : i1
    %22 = arith.extui %21 : i1 to i32
    %c0_i32_12 = arith.constant 0 : i32
    %23 = arith.cmpi ne, %22, %c0_i32_12 : i32
    scf.if %23 {
      %30 = tpu.iota {dimensions = array<i32: 0>} : vector<128x1xi32>
      %31 = vector.broadcast %16 : i32 to vector<128x1xi32>
      %32 = arith.addi %31, %30 : vector<128x1xi32>
      %33 = tpu.iota {dimensions = array<i32: 1>} : vector<1x128xi32>
      %34 = vector.broadcast %15 : i32 to vector<1x128xi32>
      %35 = arith.addi %34, %33 : vector<1x128xi32>
      %36 = vector.broadcast %32 : vector<128x1xi32> to vector<128x128xi32>
      %37 = vector.broadcast %35 : vector<1x128xi32> to vector<128x128xi32>
      %38 = arith.cmpi ne, %36, %37 : vector<128x128xi32>
      %39 = vector.broadcast %9 : vector<128x1xi1> to vector<128x128xi1>
      %40 = arith.andi %39, %38 : vector<128x128xi1>
      %41 = arith.andi %14, %38 : vector<128x128xi1>
      %cst_16 = arith.constant 0xFF800000 : f32
      %42 = vector.broadcast %cst_16 : f32 to vector<128x128xf32>
      %43 = arith.select %40, %5, %42 : vector<128x128xi1>, vector<128x128xf32>
      %c0_17 = arith.constant 0 : index
      %c0_18 = arith.constant 0 : index
      %44 = vector.load %arg8[%c0_17, %c0_18] : memref<1x128xf32, #tpu.memory_space<vmem>>, vector<1x128xf32>
      %cst_19 = arith.constant dense<0xFF800000> : vector<128xf32>
      %45 = vector.multi_reduction <maximumf>, %43, %cst_19 [0] : vector<128x128xf32> to vector<128xf32>
      %46 = vector.shape_cast %45 : vector<128xf32> to vector<1x128xf32>
      %47 = arith.maximumf %44, %46 : vector<1x128xf32>
      %48 = arith.subf %44, %47 : vector<1x128xf32>
      %49 = math.exp %48 : vector<1x128xf32>
      %c0_20 = arith.constant 0 : index
      %c0_21 = arith.constant 0 : index
      %50 = vector.load %arg9[%c0_20, %c0_21] : memref<1x128xf32, #tpu.memory_space<vmem>>, vector<1x128xf32>
      %51 = arith.mulf %50, %49 : vector<1x128xf32>
      %52 = vector.broadcast %47 : vector<1x128xf32> to vector<128x128xf32>
      %53 = arith.subf %43, %52 : vector<128x128xf32>
      %54 = math.exp %53 : vector<128x128xf32>
      %cst_22 = arith.constant dense<0.000000e+00> : vector<128xf32>
      %55 = vector.multi_reduction <add>, %54, %cst_22 [0] : vector<128x128xf32> to vector<128xf32>
      %56 = vector.shape_cast %55 : vector<128xf32> to vector<1x128xf32>
      %57 = arith.addf %51, %56 : vector<1x128xf32>
      %c0_23 = arith.constant 0 : index
      %c0_24 = arith.constant 0 : index
      %58 = vector.load %arg9[%c0_23, %c0_24] : memref<1x128xf32, #tpu.memory_space<vmem>>, vector<1x128xf32>
      tpu.vector_store %arg9[%c0_23, %c0_24], %57 {strides = array<i32>} : memref<1x128xf32, #tpu.memory_space<vmem>>, vector<1x128xf32>,
      %c0_25 = arith.constant 0 : index
      %c0_26 = arith.constant 0 : index
      %59 = vector.load %arg8[%c0_25, %c0_26] : memref<1x128xf32, #tpu.memory_space<vmem>>, vector<1x128xf32>
      tpu.vector_store %arg8[%c0_25, %c0_26], %47 {strides = array<i32>} : memref<1x128xf32, #tpu.memory_space<vmem>>, vector<1x128xf32>,
      %c0_27 = arith.constant 0 : index
      %c0_28 = arith.constant 0 : index
      %60 = vector.load %arg10[%c0_27, %c0_28] : memref<1x128xf32, #tpu.memory_space<vmem>>, vector<1x128xf32>
      %cst_29 = arith.constant 0.000000e+00 : f32
      %61 = vector.broadcast %cst_29 : f32 to vector<128x128xf32>
      %62 = arith.select %41, %5, %61 : vector<128x128xi1>, vector<128x128xf32>
      %cst_30 = arith.constant dense<0.000000e+00> : vector<128xf32>
      %63 = vector.multi_reduction <add>, %62, %cst_30 [0] : vector<128x128xf32> to vector<128xf32>
      %64 = vector.shape_cast %63 : vector<128xf32> to vector<1x128xf32>
      %65 = arith.addf %60, %64 : vector<1x128xf32>
      %c0_31 = arith.constant 0 : index
      %c0_32 = arith.constant 0 : index
      %66 = vector.load %arg10[%c0_31, %c0_32] : memref<1x128xf32, #tpu.memory_space<vmem>>, vector<1x128xf32>
      tpu.vector_store %arg10[%c0_31, %c0_32], %65 {strides = array<i32>} : memref<1x128xf32, #tpu.memory_space<vmem>>, vector<1x128xf32>,
    } else {
    }
    %true = arith.constant true
    %24 = arith.xori %21, %true : i1
    %25 = arith.extui %24 : i1 to i32
    %c0_i32_13 = arith.constant 0 : i32
    %26 = arith.cmpi ne, %25, %c0_i32_13 : i32
    scf.if %26 {
      %cst_16 = arith.constant 0xFF800000 : f32
      %30 = vector.shape_cast %9 : vector<128x1xi1> to vector<128x1xi1>
      %31 = vector.broadcast %30 : vector<128x1xi1> to vector<128x128xi1>
      %32 = vector.broadcast %cst_16 : f32 to vector<128x128xf32>
      %33 = arith.select %31, %5, %32 : vector<128x128xi1>, vector<128x128xf32>
      %c0_17 = arith.constant 0 : index
      %c0_18 = arith.constant 0 : index
      %34 = vector.load %arg8[%c0_17, %c0_18] : memref<1x128xf32, #tpu.memory_space<vmem>>, vector<1x128xf32>
      %cst_19 = arith.constant dense<0xFF800000> : vector<128xf32>
      %35 = vector.multi_reduction <maximumf>, %33, %cst_19 [0] : vector<128x128xf32> to vector<128xf32>
      %36 = vector.shape_cast %35 : vector<128xf32> to vector<1x128xf32>
      %37 = arith.maximumf %34, %36 : vector<1x128xf32>
      %38 = arith.subf %34, %37 : vector<1x128xf32>
      %39 = math.exp %38 : vector<1x128xf32>
      %c0_20 = arith.constant 0 : index
      %c0_21 = arith.constant 0 : index
      %40 = vector.load %arg9[%c0_20, %c0_21] : memref<1x128xf32, #tpu.memory_space<vmem>>, vector<1x128xf32>
      %41 = arith.mulf %40, %39 : vector<1x128xf32>
      %42 = vector.broadcast %37 : vector<1x128xf32> to vector<128x128xf32>
      %43 = arith.subf %33, %42 : vector<128x128xf32>
      %44 = math.exp %43 : vector<128x128xf32>
      %cst_22 = arith.constant dense<0.000000e+00> : vector<128xf32>
      %45 = vector.multi_reduction <add>, %44, %cst_22 [0] : vector<128x128xf32> to vector<128xf32>
      %46 = vector.shape_cast %45 : vector<128xf32> to vector<1x128xf32>
      %47 = arith.addf %41, %46 : vector<1x128xf32>
      %c0_23 = arith.constant 0 : index
      %c0_24 = arith.constant 0 : index
      %48 = vector.load %arg9[%c0_23, %c0_24] : memref<1x128xf32, #tpu.memory_space<vmem>>, vector<1x128xf32>
      tpu.vector_store %arg9[%c0_23, %c0_24], %47 {strides = array<i32>} : memref<1x128xf32, #tpu.memory_space<vmem>>, vector<1x128xf32>,
      %c0_25 = arith.constant 0 : index
      %c0_26 = arith.constant 0 : index
      %49 = vector.load %arg8[%c0_25, %c0_26] : memref<1x128xf32, #tpu.memory_space<vmem>>, vector<1x128xf32>
      tpu.vector_store %arg8[%c0_25, %c0_26], %37 {strides = array<i32>} : memref<1x128xf32, #tpu.memory_space<vmem>>, vector<1x128xf32>,
      %c0_27 = arith.constant 0 : index
      %c0_28 = arith.constant 0 : index
      %50 = vector.load %arg10[%c0_27, %c0_28] : memref<1x128xf32, #tpu.memory_space<vmem>>, vector<1x128xf32>
      %cst_29 = arith.constant 0.000000e+00 : f32
      %51 = vector.broadcast %cst_29 : f32 to vector<128x128xf32>
      %52 = arith.select %14, %5, %51 : vector<128x128xi1>, vector<128x128xf32>
      %cst_30 = arith.constant dense<0.000000e+00> : vector<128xf32>
      %53 = vector.multi_reduction <add>, %52, %cst_30 [0] : vector<128x128xf32> to vector<128xf32>
      %54 = vector.shape_cast %53 : vector<128xf32> to vector<1x128xf32>
      %55 = arith.addf %50, %54 : vector<1x128xf32>
      %c0_31 = arith.constant 0 : index
      %c0_32 = arith.constant 0 : index
      %56 = vector.load %arg10[%c0_31, %c0_32] : memref<1x128xf32, #tpu.memory_space<vmem>>, vector<1x128xf32>
      tpu.vector_store %arg10[%c0_31, %c0_32], %55 {strides = array<i32>} : memref<1x128xf32, #tpu.memory_space<vmem>>, vector<1x128xf32>,
    } else {
    }
    %c0_i32_14 = arith.constant 0 : i32
    %27 = arith.cmpi eq, %arg1, %c0_i32_14 : i32
    %28 = arith.extui %27 : i1 to i32
    %c0_i32_15 = arith.constant 0 : i32
    %29 = arith.cmpi ne, %28, %c0_i32_15 : i32
    scf.if %29 {
      %c0_16 = arith.constant 0 : index
      %c0_17 = arith.constant 0 : index
      %30 = vector.load %arg8[%c0_16, %c0_17] : memref<1x128xf32, #tpu.memory_space<vmem>>, vector<1x128xf32>
      %c0_18 = arith.constant 0 : index
      %c0_19 = arith.constant 0 : index
      %31 = vector.load %arg9[%c0_18, %c0_19] : memref<1x128xf32, #tpu.memory_space<vmem>>, vector<1x128xf32>
      %32 = math.log %31 : vector<1x128xf32>
      %33 = arith.addf %30, %32 : vector<1x128xf32>
      %c0_20 = arith.constant 0 : index
      %c0_21 = arith.constant 0 : index
      %34 = vector.load %arg6[%c0_20, %c0_21] : memref<1x128xf32, #tpu.memory_space<vmem>>, vector<1x128xf32>
      tpu.vector_store %arg6[%c0_20, %c0_21], %33 {strides = array<i32>} : memref<1x128xf32, #tpu.memory_space<vmem>>, vector<1x128xf32>,
      %c0_22 = arith.constant 0 : index
      %c0_23 = arith.constant 0 : index
      %35 = vector.load %arg10[%c0_22, %c0_23] : memref<1x128xf32, #tpu.memory_space<vmem>>, vector<1x128xf32>
      %c0_24 = arith.constant 0 : index
      %c0_25 = arith.constant 0 : index
      %36 = vector.load %arg7[%c0_24, %c0_25] : memref<1x128xf32, #tpu.memory_space<vmem>>, vector<1x128xf32>
      tpu.vector_store %arg7[%c0_24, %c0_25], %35 {strides = array<i32>} : memref<1x128xf32, #tpu.memory_space<vmem>>, vector<1x128xf32>,
    } else {
    }
    return
  }
  func.func @transform_0(%arg0: i32, %arg1: i32) -> (i32, i32) {
    %c0_i32 = arith.constant 0 : i32
    %c0_i32_0 = arith.constant 0 : i32
    return %c0_i32, %arg0 : i32, i32
  }
  func.func @transform_1(%arg0: i32, %arg1: i32) -> (i32, i32) {
    %c0_i32 = arith.constant 0 : i32
    %c0_i32_0 = arith.constant 0 : i32
    return %arg1, %c0_i32 : i32, i32
  }
  func.func @transform_2(%arg0: i32, %arg1: i32) -> (i32, i32) {
    %c0_i32 = arith.constant 0 : i32
    %c0_i32_0 = arith.constant 0 : i32
    return %c0_i32, %arg0 : i32, i32
  }
  func.func @transform_3(%arg0: i32, %arg1: i32) -> (i32, i32) {
    %c0_i32 = arith.constant 0 : i32
    %c0_i32_0 = arith.constant 0 : i32
    return %arg1, %c0_i32 : i32, i32
  }
  func.func @transform_4(%arg0: i32, %arg1: i32) -> (i32, i32) {
    %c0_i32 = arith.constant 0 : i32
    %c0_i32_0 = arith.constant 0 : i32
    return %c0_i32, %arg0 : i32, i32
  }
  func.func @transform_5(%arg0: i32, %arg1: i32) -> (i32, i32) {
    %c0_i32 = arith.constant 0 : i32
    %c0_i32_0 = arith.constant 0 : i32
    return %c0_i32, %arg0 : i32, i32
  }
}

</mosaic_0001>

<bundles_post_ra>
// kernel: tpu_custom_call.1
= control target key start
LH: loop header
LB: loop body
LE: loop exit
PB: predicated region body
PF: predicated region fallthrough
CT: control target
= control target key end

     0   :  { %11 = vsyncpa [#allocation6], 0  ;;  %s2980_s0 = inlined_call_operand.vmem [shape: s32[1,128], index: 0, kind: input, shape index: {}]   ;;  %s2981_s1 = inlined_call_operand.vmem [shape: s32[128,1], index: 1, kind: input, shape index: {}]   ;;  %s2982_s2 = inlined_call_operand.hbm [shape: bf16[768,128], index: 2, kind: input, shape index: {}]   ;;  %s2983_s3 = inlined_call_operand.hbm [shape: bf16[128,768], index: 3, kind: input, shape index: {}]   ;;  %s2984_s4 = inlined_call_operand.hbm [shape: f32[1,128], index: 4, kind: output, shape index: {0}]   ;;  %s2985_s5 = inlined_call_operand.hbm [shape: f32[1,128], index: 5, kind: output, shape index: {1}]  }
   0x1   :  { %12 = vsyncpa [#allocation9], 0 }
   0x2   :  { %13 = vsyncpa [#allocation7], 0 }
   0x3   :  { %14 = vsyncpa [#allocation12], 0  ;;  %s2251_s18 = smov [#allocation5]   ;;  %s2155_s22 = scalar_lea.hbm %s2982_s2, 6144 }
   0x4   :  { %s24_s19 = sshll.u32 %s2251_s18, 4  ;;  %p2156_p0 = scmp.ne.s32.totalorder %s2982_s2, %s2155_s22  ;;  %s25_s19 = int_to_ptr.vmem [resolvable:$true] %s24_s19 }
   0x5   :  { %p2159_p1 = scmp.lt.u32.totalorder %s2155_s22, %s2982_s2 }
   0x7   :  { %p2161_p2 = pnand %p2159_p1, %p2156_p0 }
   0x9   :  { %2164 = shalt.err (!%p2161_p2)
}
   0xa   :  { %s2165_s27 = scalar_lea.vmem %s25_s19, 6144  ;;  %p2170_p4 = scmp.lt.s32.totalorder %s25_s19, %s25_s19 }
   0xb   :  { %p2166_p3 = scmp.ne.s32.totalorder %s25_s19, %s2165_s27  ;;  %p2171_p5 = scmp.lt.s32.totalorder %s2165_s27, %s2165_s27 }
   0xd   :  { %p2172_p6 = por %p2171_p5, %p2170_p4 }
   0xf   :  { %p2173_p7 = pnand %p2172_p6, %p2166_p3 }
  0x11   :  { %2176 = shalt.err (!%p2173_p7)
}
  0x12   :  { %s2252_s28 = smov 64   ;;  %s2253_s29 = smov 4  }
  0x13   :  { %30 = dma.hbm_to_vmem [thread:$0]  %s2982_s2, 6144, %s25_s19, [#allocation6], %s2252_s28, %s2252_s28, %s2253_s29  }
  0x14   :  { %s2254_s7 = smov [#allocation8]   ;;  %s2177_s11 = scalar_lea.hbm %s2983_s3, 6144 }
  0x15   :  { %s36_s8 = sshll.u32 %s2254_s7, 4  ;;  %p2178_p8 = scmp.ne.s32.totalorder %s2983_s3, %s2177_s11  ;;  %s37_s8 = int_to_ptr.vmem [resolvable:$true] %s36_s8 }
  0x16   :  { %p2181_p9 = scmp.lt.u32.totalorder %s2177_s11, %s2983_s3 }
  0x18   :  { %p2183_p10 = pnand %p2181_p9, %p2178_p8 }
  0x1a   :  { %2186 = shalt.err (!%p2183_p10)
}
  0x1b   :  { %s2187_s16 = scalar_lea.vmem %s37_s8, 6144  ;;  %p2192_p12 = scmp.lt.s32.totalorder %s37_s8, %s37_s8 }
  0x1c   :  { %p2188_p11 = scmp.ne.s32.totalorder %s37_s8, %s2187_s16  ;;  %p2193_p13 = scmp.lt.s32.totalorder %s2187_s16, %s2187_s16 }
  0x1e   :  { %p2194_p0 = por %p2193_p13, %p2192_p12 }
  0x20   :  { %p2195_p1 = pnand %p2194_p0, %p2188_p11 }
  0x22   :  { %2198 = shalt.err (!%p2195_p1)
}
  0x23   :  { %s2255_s2 = smov 384   ;;  %s2256_s17 = smov 24  }
  0x24   :  { %42 = dma.hbm_to_vmem [thread:$0]  %s2983_s3, 6144, %s37_s8, [#allocation9], %s2255_s2, %s2255_s2, %s2256_s17  }
  0x25   :  { %2243 = dma.done.wait [#allocation6], 6144  }
  0x26   :  { %2244 = vsyncadd [#allocation6], 4294961152 }
  0x27   :  { %2245 = dma.done.wait [#allocation9], 6144  }
  0x28   :  { %2246 = vsyncadd [#allocation9], 4294961152  ;;  %v2257_v0 = vmov 0   ;;  %v1999_v1 = vld [vmem:[#allocation5 + $0x40] sm:$0xff]   ;;  %v2001_v3 = vld [vmem:[#allocation5 + $0x48] sm:$0xff]  }
  0x29   :  { %1997 = vset.pattern.permute.xlu0 %v2257_v0  ;;  %1998 = vset.pattern.permute.xlu1 %v2257_v0  ;;  %v2000_v2 = vld [vmem:[#allocation5] sm:$0xff]   ;;  %v2002_v4 = vld [vmem:[#allocation5 + $0x8] sm:$0xff]   ;;  %v2003_v5 = vld [vmem:[#allocation5 + $0x50] sm:$0xff]  }
  0x2a   :  { %1778 = vmatprep.subr.bf16.mxu0 %v1999_v1  ;;  %1970 = vmatprep.subr.bf16.mxu1 %v1999_v1  ;;  %v2004_v6 = vld [vmem:[#allocation5 + $0x10] sm:$0xff]   ;;  %v2005_v7 = vld [vmem:[#allocation5 + $0x58] sm:$0xff]   ;;  %v2007_v9 = vld [vmem:[#allocation5 + $0x60] sm:$0xff]  }
  0x2b   :  { %1779 = vmatpush3.bf16.msra.mxu0 %v2000_v2  ;;  %1978 = vmatpush3.bf16.msra.mxu1 %v2000_v2  ;;  %v2006_v8 = vld [vmem:[#allocation5 + $0x18] sm:$0xff]   ;;  %v2008_v10 = vld [vmem:[#allocation5 + $0x20] sm:$0xff]   ;;  %v2009_v11 = vld [vmem:[#allocation5 + $0x68] sm:$0xff]  }
  0x2c   :  { %1780 = vmatprep.subr.bf16.mxu0 %v2001_v3  ;;  %1971 = vmatprep.subr.bf16.mxu1 %v2001_v3  ;;  %v2017_v12 = vld [vmem:[#allocation8 + $0x4] ss:$24 sps:$4 sm:$0xff]   ;;  %v2010_v14 = vld [vmem:[#allocation5 + $0x28] sm:$0xff]   ;;  %v2011_v15 = vld [vmem:[#allocation5 + $0x70] sm:$0xff]  }
  0x2d   :  { %v2020_v13 = vld [vmem:[#allocation8 + $0xc4] ss:$24 sps:$4 sm:$0xff]   ;;  %761 = vmatprep.mubr.bf16.mxu0 %v2017_v12  ;;  %v2012_v16 = vld [vmem:[#allocation5 + $0x30] sm:$0xff]   ;;  %v2015_v19 = vld [vmem:[#allocation8] ss:$24 sps:$4 sm:$0xff]  }
  0x2e   :  { %793 = vmatprep.mubr.bf16.mxu1 %v2020_v13  ;;  %v2013_v17 = vld [vmem:[#allocation5 + $0x78] sm:$0xff]   ;;  %v2021_v21 = vld [vmem:[#allocation5 + $0xc0] sm:$0xff]   ;;  %v2025_v25 = vld [vmem:[#allocation5 + $0xc8] sm:$0xff]  }
  0x2f   :  { %1781 = vmatpush3.bf16.msra.mxu0 %v2002_v4  ;;  %1979 = vmatpush3.bf16.msra.mxu1 %v2002_v4  ;;  %v2014_v18 = vld [vmem:[#allocation5 + $0x38] sm:$0xff]   ;;  %v2022_v22 = vld [vmem:[#allocation5 + $0x140] sm:$0xff]   ;;  %v2026_v26 = vld [vmem:[#allocation5 + $0x148] sm:$0xff]  }
  0x30   :  { %1782 = vmatprep.subr.bf16.mxu0 %v2003_v5  ;;  %1972 = vmatprep.subr.bf16.mxu1 %v2003_v5  ;;  %v2018_v20 = vld [vmem:[#allocation8 + $0xc0] ss:$24 sps:$4 sm:$0xff]   ;;  %v2029_v27 = vld [vmem:[#allocation8 + $0x34] ss:$24 sps:$4 sm:$0xff]   ;;  %v2033_v32 = vld [vmem:[#allocation8 + $0x30] ss:$24 sps:$4 sm:$0xff]  }
  0x31   :  { %v2023_v23 = vld [vmem:[#allocation5 + $0x80] sm:$0xff]   ;;  %v2027_v28 = vld [vmem:[#allocation5 + $0x88] sm:$0xff]   ;;  %v2035_v31 = vld [vmem:[#allocation5 + $0xd0] sm:$0xff]  }
  0x32   :  { %v2024_v24 = vld [vmem:[#allocation5 + $0x100] sm:$0xff]   ;;  %v2031_v29 = vld [vmem:[#allocation8 + $0xf4] ss:$24 sps:$4 sm:$0xff]   ;;  %v2034_v34 = vld [vmem:[#allocation8 + $0xf0] ss:$24 sps:$4 sm:$0xff]  }
  0x33   :  { %1783 = vmatpush3.bf16.msra.mxu0 %v2004_v6  ;;  %1980 = vmatpush3.bf16.msra.mxu1 %v2004_v6  ;;  %v2028_v30 = vld [vmem:[#allocation5 + $0x108] sm:$0xff]   ;;  %v2036_v33 = vld [vmem:[#allocation5 + $0x150] sm:$0xff]   ;;  %v2039_v37 = vld [vmem:[#allocation5 + $0xd8] sm:$0xff]  }
  0x34   :  { %1784 = vmatprep.subr.bf16.mxu0 %v2005_v7  ;;  %1973 = vmatprep.subr.bf16.mxu1 %v2005_v7  ;;  %v2037_v35 = vld [vmem:[#allocation5 + $0x90] sm:$0xff]   ;;  %v2040_v38 = vld [vmem:[#allocation5 + $0x158] sm:$0xff]   ;;  %v2049_v43 = vld [vmem:[#allocation5 + $0xe0] sm:$0xff]  }
  0x35   :  { %v2038_v36 = vld [vmem:[#allocation5 + $0x110] sm:$0xff]   ;;  %v2043_v39 = vld [vmem:[#allocation8 + $0x64] ss:$24 sps:$4 sm:$0xff]   ;;  %v2047_v44 = vld [vmem:[#allocation8 + $0x60] ss:$24 sps:$4 sm:$0xff]  }
  0x36   :  { %v2041_v40 = vld [vmem:[#allocation5 + $0x98] sm:$0xff]   ;;  %v2050_v46 = vld [vmem:[#allocation5 + $0x160] sm:$0xff]   ;;  %v2053_v49 = vld [vmem:[#allocation5 + $0xe8] sm:$0xff]  }
  0x37   :  { %1785 = vmatpush3.bf16.msra.mxu0 %v2006_v8  ;;  %1981 = vmatpush3.bf16.msra.mxu1 %v2006_v8  ;;  %v2045_v41 = vld [vmem:[#allocation8 + $0x124] ss:$24 sps:$4 sm:$0xff]   ;;  %v2048_v45 = vld [vmem:[#allocation8 + $0x120] ss:$24 sps:$4 sm:$0xff]   ;;  %v2054_v50 = vld [vmem:[#allocation5 + $0x168] sm:$0xff]  }
  0x38   :  { %1786 = vmatprep.subr.bf16.mxu0 %v2007_v9  ;;  %1974 = vmatprep.subr.bf16.mxu1 %v2007_v9  ;;  %v2042_v42 = vld [vmem:[#allocation5 + $0x118] sm:$0xff]   ;;  %v2051_v47 = vld [vmem:[#allocation5 + $0xa0] sm:$0xff]   ;;  %v2057_v51 = vld [vmem:[#allocation8 + $0x94] ss:$24 sps:$4 sm:$0xff]  }
  0x39   :  { %v2052_v48 = vld [vmem:[#allocation5 + $0x120] sm:$0xff]   ;;  %v2059_v52 = vld [vmem:[#allocation8 + $0x154] ss:$24 sps:$4 sm:$0xff]   ;;  %v2061_v56 = vld [vmem:[#allocation8 + $0x90] ss:$24 sps:$4 sm:$0xff]  }
  0x3a   :  { %v2055_v53 = vld [vmem:[#allocation5 + $0xa8] sm:$0xff]   ;;  %v2063_v55 = vld [vmem:[#allocation5 + $0xf0] sm:$0xff]   ;;  %v2067_v61 = vld [vmem:[#allocation5 + $0xf8] sm:$0xff]  }
  0x3b   :  { %1787 = vmatpush3.bf16.msra.mxu0 %v2008_v10  ;;  %1982 = vmatpush3.bf16.msra.mxu1 %v2008_v10  ;;  %v2056_v54 = vld [vmem:[#allocation5 + $0x128] sm:$0xff]   ;;  %v2064_v58 = vld [vmem:[#allocation5 + $0x170] sm:$0xff]   ;;  %v2068_v62 = vld [vmem:[#allocation5 + $0x178] sm:$0xff]  }
  0x3c   :  { %1788 = vmatprep.subr.bf16.mxu0 %v2009_v11  ;;  %1975 = vmatprep.subr.bf16.mxu1 %v2009_v11  ;;  %v2062_v57 = vld [vmem:[#allocation8 + $0x150] ss:$24 sps:$4 sm:$0xff]   ;;  %v2069_v63 = vld [vmem:[#allocation5 + $0xb8] sm:$0xff]   ;;  %v2073_v2 = vld [vmem:[#allocation8 + $0xc] ss:$24 sps:$4 sm:$0xff]  }
  0x3d   :  { %v2065_v59 = vld [vmem:[#allocation5 + $0xb0] sm:$0xff]   ;;  %v2070_v1 = vld [vmem:[#allocation5 + $0x138] sm:$0xff]   ;;  %v2071_v3 = vld [vmem:[#allocation8 + $0x8] ss:$24 sps:$4 sm:$0xff]  }
  0x3e   :  { %v2066_v60 = vld [vmem:[#allocation5 + $0x130] sm:$0xff]   ;;  %v2079_v7 = vld [vmem:[#allocation8 + $0x44] ss:$24 sps:$4 sm:$0xff]   ;;  %v2082_v9 = vld [vmem:[#allocation8 + $0x40] ss:$24 sps:$4 sm:$0xff]  }
  0x3f   :  { %1789 = vmatpush3.bf16.msra.mxu0 %v2010_v14  ;;  %1983 = vmatpush3.bf16.msra.mxu1 %v2010_v14  ;;  %v2076_v4 = vld [vmem:[#allocation8 + $0x14] ss:$24 sps:$4 sm:$0xff]   ;;  %v2074_v5 = vld [vmem:[#allocation8 + $0x10] ss:$24 sps:$4 sm:$0xff]  }
  0x40   :  { %1790 = vmatprep.subr.bf16.mxu0 %v2011_v15  ;;  %1976 = vmatprep.subr.bf16.mxu1 %v2011_v15  ;;  %v2077_v6 = vld [vmem:[#allocation8 + $0x3c] ss:$24 sps:$4 sm:$0xff]   ;;  %v2081_v8 = vld [vmem:[#allocation8 + $0x38] ss:$24 sps:$4 sm:$0xff]   ;;  %v2083_v10 = vld [vmem:[#allocation8 + $0x6c] ss:$24 sps:$4 sm:$0xff]  }
  0x41   :  { %v2085_v11 = vld [vmem:[#allocation8 + $0x74] ss:$24 sps:$4 sm:$0xff]   ;;  %v2087_v12 = vld [vmem:[#allocation8 + $0x68] ss:$24 sps:$4 sm:$0xff]   ;;  %v2091_v15 = vld [vmem:[#allocation8 + $0xa4] ss:$24 sps:$4 sm:$0xff]  }
  0x42   :  { %v2088_v13 = vld [vmem:[#allocation8 + $0x70] ss:$24 sps:$4 sm:$0xff]   ;;  %v2089_v14 = vld [vmem:[#allocation8 + $0x9c] ss:$24 sps:$4 sm:$0xff]  }
  0x43   :  { %1791 = vmatpush3.bf16.msra.mxu0 %v2012_v16  ;;  %1984 = vmatpush3.bf16.msra.mxu1 %v2012_v16  ;;  %v2321_v16 = vld [vmem:[%s2981_s1] sm:$0xff] }
  0x44   :  { %1792 = vmatprep.subr.bf16.mxu0 %v2013_v17  ;;  %1977 = vmatprep.subr.bf16.mxu1 %v2013_v17  ;;  %vm1037_vm0 = vcmp.ge.s32.totalorder %v2321_v16, 0  ;;  %v2327_v17 = vld [vmem:[%s2981_s1 + $0x10] sm:$0xff] }
  0x45   :  { %vm1039_vm1 = vcmp.ge.s32.totalorder %v2327_v17, 0 }
  0x47   :  { %1793 = vmatpush3.bf16.msra.mxu0 %v2014_v18  ;;  %1985 = vmatpush3.bf16.msra.mxu1 %v2014_v18  ;;  %v2332_v18 = vld [vmem:[%s2981_s1 + $0x8] sm:$0xff] }
  0x48   :  { %1842 = vmatprep.subr.bf16.mxu1 %v2021_v21  ;;  %1906 = vmatprep.subr.bf16.mxu0 %v2022_v22  ;;  %v1123_v21 = vsel %vm1039_vm1, 1, %v2257_v0  ;;  %vm1038_vm2 = vcmp.ge.s32.totalorder %v2332_v18, 0  ;;  %v2347_v22 = vld [vmem:[%s2981_s1 + $0x20] sm:$0xff] }
  0x49   :  { %1144 = vperm.xlu1 %1998, %v1123_v21   ;;  %vm1041_vm4 = vcmp.ge.s32.totalorder %v2347_v22, 0 }
  0x4a   :  { %762 = vmatmul.mubr.bf16.vlgmr.msra.gmra.mrb[0].mxu0 %v2015_v19  ;;  %794 = vmatmul.mubr.bf16.vlgmr.msra.gmra.mrb[0].mxu1 %v2018_v20  ;;  %v1121_v19 = vsel %vm1037_vm0, 1, %v2257_v0  ;;  %v2339_v20 = vld [vmem:[%s2981_s1 + $0x18] sm:$0xff] }
  0x4b   :  { %1843 = vmatpush3.bf16.msra.mxu1 %v2023_v23  ;;  %1907 = vmatpush3.bf16.msra.mxu0 %v2024_v24  ;;  %vm1040_vm3 = vcmp.ge.s32.totalorder %v2339_v20, 0  ;;  %v2352_v23 = vld [vmem:[%s2981_s1 + $0x28] sm:$0xff]  ;;  %v2093_v24 = vld [vmem:[#allocation8 + $0x98] ss:$24 sps:$4 sm:$0xff]  }
  0x4c   :  { %1844 = vmatprep.subr.bf16.mxu1 %v2025_v25  ;;  %1908 = vmatprep.subr.bf16.mxu0 %v2026_v26  ;;  %v1122_v25 = vsel %vm1038_vm2, 1, %v2257_v0  ;;  %v1124_v26 = vsel %vm1040_vm3, 1, %v2257_v0  ;;  %vm1042_vm5 = vcmp.ge.s32.totalorder %v2352_v23, 0 }
  0x4d   :  { %769 = vmatprep.mubr.bf16.mxu0 %v2029_v27  ;;  %801 = vmatprep.mubr.bf16.mxu1 %v2031_v29  ;;  %v2094_v27 = vld [vmem:[#allocation8 + $0xa0] ss:$24 sps:$4 sm:$0xff]   ;;  %v2097_v29 = vld [vmem:[#allocation8 + $0xd4] ss:$24 sps:$4 sm:$0xff]  }
  0x4e   :  { %1138 = vperm.xlu0 %1997, %v1121_v19   ;;  %1147 = vperm.xlu1 %1998, %v1124_v26  }
  0x4f   :  { %1845 = vmatpush3.bf16.msra.mxu1 %v2027_v28  ;;  %1909 = vmatpush3.bf16.msra.mxu0 %v2028_v30  ;;  %v2095_v28 = vld [vmem:[#allocation8 + $0xcc] ss:$24 sps:$4 sm:$0xff]  }
  0x50   :  { %1846 = vmatprep.subr.bf16.mxu1 %v2035_v31  ;;  %1910 = vmatprep.subr.bf16.mxu0 %v2036_v33  ;;  %v2361_v30 = vld [vmem:[%s2981_s1 + $0x30] sm:$0xff]  ;;  %v2366_v31 = vld [vmem:[%s2981_s1 + $0x38] sm:$0xff]  ;;  %v1126_v33 = vsel %vm1042_vm5, 1, %v2257_v0 }
  0x51   :  { %vm1043_vm6 = vcmp.ge.s32.totalorder %v2361_v30, 0  ;;  %vm1044_vm7 = vcmp.ge.s32.totalorder %v2366_v31, 0 }
  0x52   :  { %770 = vmatmul.mubr.bf16.gmra.mrb[4].mxu0 %v2033_v32  ;;  %802 = vmatmul.mubr.bf16.gmra.mrb[4].mxu1 %v2034_v34  ;;  %v1125_v32 = vsel %vm1041_vm4, 1, %v2257_v0  ;;  %v2375_v34 = vld [vmem:[%s2981_s1 + $0x40] sm:$0xff] }
  0x53   :  { %1847 = vmatpush3.bf16.msra.mxu1 %v2037_v35  ;;  %1911 = vmatpush3.bf16.msra.mxu0 %v2038_v36  ;;  %v2380_v35 = vld [vmem:[%s2981_s1 + $0x48] sm:$0xff]  ;;  %vm1045_vm8 = vcmp.ge.s32.totalorder %v2375_v34, 0 }
  0x54   :  { %1848 = vmatprep.subr.bf16.mxu1 %v2039_v37  ;;  %1912 = vmatprep.subr.bf16.mxu0 %v2040_v38  ;;  %v2099_v36 = vld [vmem:[#allocation8 + $0xc8] ss:$24 sps:$4 sm:$0xff]   ;;  %v1127_v37 = vsel %vm1043_vm6, 1, %v2257_v0  ;;  %v1128_v38 = vsel %vm1044_vm7, 1, %v2257_v0  ;;  %vm1046_vm9 = vcmp.ge.s32.totalorder %v2380_v35, 0 }
  0x55   :  { %777 = vmatprep.mubr.bf16.mxu0 %v2043_v39  ;;  %809 = vmatprep.mubr.bf16.mxu1 %v2045_v41  ;;  %v2100_v39 = vld [vmem:[#allocation8 + $0xd0] ss:$24 sps:$4 sm:$0xff]   ;;  %v2103_v41 = vld [vmem:[#allocation8 + $0x104] ss:$24 sps:$4 sm:$0xff]  }
  0x56   :  { %1141 = vperm.xlu0 %1997, %v1122_v25   ;;  %1153 = vperm.xlu1 %1998, %v1126_v33  }
  0x57   :  { %1849 = vmatpush3.bf16.msra.mxu1 %v2041_v40  ;;  %1913 = vmatpush3.bf16.msra.mxu0 %v2042_v42  ;;  %v2101_v40 = vld [vmem:[#allocation8 + $0xfc] ss:$24 sps:$4 sm:$0xff]  }
  0x58   :  { %1850 = vmatprep.subr.bf16.mxu1 %v2049_v43  ;;  %1914 = vmatprep.subr.bf16.mxu0 %v2050_v46  ;;  %v2389_v42 = vld [vmem:[%s2981_s1 + $0x50] sm:$0xff]  ;;  %v1032_v43 = vld [vmem:[%s2981_s1 + $0x58] sm:$0xff]  ;;  %v1033_v46 = vld [vmem:[%s2981_s1 + $0x60] sm:$0xff] }
  0x59   :  { %vm1047_vm10 = vcmp.ge.s32.totalorder %v2389_v42, 0  ;;  %vm1048_vm11 = vcmp.ge.s32.totalorder %v1032_v43, 0  ;;  %vm1049_vm12 = vcmp.ge.s32.totalorder %v1033_v46, 0 }
  0x5a   :  { %778 = vmatmul.mubr.bf16.gmra.mrb[8].mxu0 %v2047_v44  ;;  %810 = vmatmul.mubr.bf16.gmra.mrb[8].mxu1 %v2048_v45  ;;  %v1129_v44 = vsel %vm1045_vm8, 1, %v2257_v0  ;;  %v1130_v45 = vsel %vm1046_vm9, 1, %v2257_v0 }
  0x5b   :  { %1851 = vmatpush3.bf16.msra.mxu1 %v2051_v47  ;;  %1915 = vmatpush3.bf16.msra.mxu0 %v2052_v48  ;;  %v1034_v47 = vld [vmem:[%s2981_s1 + $0x68] sm:$0xff]  ;;  %v2105_v48 = vld [vmem:[#allocation8 + $0xf8] ss:$24 sps:$4 sm:$0xff]  }
  0x5c   :  { %1852 = vmatprep.subr.bf16.mxu1 %v2053_v49  ;;  %1916 = vmatprep.subr.bf16.mxu0 %v2054_v50  ;;  %v1131_v49 = vsel %vm1047_vm10, 1, %v2257_v0  ;;  %v1132_v50 = vsel %vm1048_vm11, 1, %v2257_v0  ;;  %vm1050_vm13 = vcmp.ge.s32.totalorder %v1034_v47, 0 }
  0x5d   :  { %785 = vmatprep.mubr.bf16.mxu0 %v2057_v51  ;;  %817 = vmatprep.mubr.bf16.mxu1 %v2059_v52  ;;  %v2106_v51 = vld [vmem:[#allocation8 + $0x100] ss:$24 sps:$4 sm:$0xff]   ;;  %v2107_v52 = vld [vmem:[#allocation8 + $0x12c] ss:$24 sps:$4 sm:$0xff]  }
  0x5e   :  { %1150 = vperm.xlu0 %1997, %v1125_v32   ;;  %1159 = vperm.xlu1 %1998, %v1128_v38  }
  0x5f   :  { %1853 = vmatpush3.bf16.msra.mxu1 %v2055_v53  ;;  %1917 = vmatpush3.bf16.msra.mxu0 %v2056_v54  ;;  %v2109_v53 = vld [vmem:[#allocation8 + $0x134] ss:$24 sps:$4 sm:$0xff]  }
  0x60   :  { %1854 = vmatprep.subr.bf16.mxu1 %v2063_v55  ;;  %1918 = vmatprep.subr.bf16.mxu0 %v2064_v58  ;;  %v1035_v54 = vld [vmem:[%s2981_s1 + $0x70] sm:$0xff]  ;;  %v1036_v55 = vld [vmem:[%s2981_s1 + $0x78] sm:$0xff] }
  0x61   :  { %vm1051_vm14 = vcmp.ge.s32.totalorder %v1035_v54, 0  ;;  %vm1052_vm15 = vcmp.ge.s32.totalorder %v1036_v55, 0 }
  0x62   :  { %786 = vmatmul.mubr.bf16.gmra.mrb[12].mxu0 %v2061_v56  ;;  %818 = vmatmul.mubr.bf16.gmra.mrb[12].mxu1 %v2062_v57  ;;  %v1133_v56 = vsel %vm1049_vm12, 1, %v2257_v0  ;;  %v1134_v57 = vsel %vm1050_vm13, 1, %v2257_v0  ;;  %v1135_v58 = vsel %vm1051_vm14, 1, %v2257_v0 }
  0x63   :  { %1855 = vmatpush3.bf16.msra.mxu1 %v2065_v59  ;;  %1919 = vmatpush3.bf16.msra.mxu0 %v2066_v60  ;;  %v1136_v59 = vsel %vm1052_vm15, 1, %v2257_v0  ;;  %v2111_v60 = vld [vmem:[#allocation8 + $0x128] ss:$24 sps:$4 sm:$0xff]   ;;  %v2258_v0 = vmov -inf  }
  0x64   :  { %1856 = vmatprep.subr.bf16.mxu1 %v2067_v61  ;;  %1920 = vmatprep.subr.bf16.mxu0 %v2068_v62  ;;  %v2112_v61 = vld [vmem:[#allocation8 + $0x130] ss:$24 sps:$4 sm:$0xff]   ;;  %v2113_v62 = vld [vmem:[#allocation8 + $0x15c] ss:$24 sps:$4 sm:$0xff]   ;;  %54 = vst [vmem:[#allocation2] sm:$0x1] %v2258_v0 }
  0x65   :  { %858 = vmatprep.mubr.bf16.mxu1 %v2073_v2  ;;  %955 = vmatprep.mubr.bf16.mxu0 %v2076_v4  ;;  %v2118_v2 = vld [vmem:[#allocation8 + $0x160] ss:$24 sps:$4 sm:$0xff]  }
  0x66   :  { %1156 = vperm.xlu0 %1997, %v1127_v37   ;;  %1165 = vperm.xlu1 %1998, %v1130_v45  }
  0x67   :  { %1857 = vmatpush3.bf16.msra.mxu1 %v2069_v63  ;;  %1921 = vmatpush3.bf16.msra.mxu0 %v2070_v1  ;;  %v2115_v63 = vld [vmem:[#allocation8 + $0x164] ss:$24 sps:$4 sm:$0xff]   ;;  %v2117_v1 = vld [vmem:[#allocation8 + $0x158] ss:$24 sps:$4 sm:$0xff]  }
  0x6a   :  { %859 = vmatmul.mubr.bf16.vlgmr.msra.gmra.mrb[16].mxu1 %v2071_v3  ;;  %956 = vmatmul.mubr.bf16.vlgmr.msra.gmra.mrb[16].mxu0 %v2074_v5  ;;  %v2259_v3 = vmov 0.0  }
  0x6b   :  { %866 = vmatprep.mubr.bf16.mxu1 %v2077_v6  ;;  %963 = vmatprep.mubr.bf16.mxu0 %v2079_v7  ;;  %55 = vst [vmem:[#allocation3] sm:$0x1] %v2259_v3  ;;  %56 = vst [vmem:[#allocation4] sm:$0x1] %v2259_v3 }
  0x6c   :  { %1162 = vperm.xlu0 %1997, %v1129_v44   ;;  %1171 = vperm.xlu1 %1998, %v1132_v50  }
  0x70   :  { %1168 = vperm.xlu0 %1997, %v1131_v49   ;;  %1177 = vperm.xlu1 %1998, %v1134_v57  }
  0x72   :  { %867 = vmatmul.mubr.bf16.gmra.mrb[20].mxu1 %v2081_v8  ;;  %964 = vmatmul.mubr.bf16.gmra.mrb[20].mxu0 %v2082_v9 }
  0x73   :  { %874 = vmatprep.mubr.bf16.mxu1 %v2083_v10  ;;  %971 = vmatprep.mubr.bf16.mxu0 %v2085_v11 }
  0x74   :  { %1174 = vperm.xlu0 %1997, %v1133_v56   ;;  %1183 = vperm.xlu1 %1998, %v1136_v59  }
  0x78   :  { %1180 = vperm.xlu0 %1997, %v1135_v58   ;;  %1057 = vperm.xlu1 %1998, %v2332_v18  }
  0x7a   :  { %875 = vmatmul.mubr.bf16.gmra.mrb[24].mxu1 %v2087_v12  ;;  %972 = vmatmul.mubr.bf16.gmra.mrb[24].mxu0 %v2088_v13 }
  0x7b   :  { %882 = vmatprep.mubr.bf16.mxu1 %v2089_v14  ;;  %979 = vmatprep.mubr.bf16.mxu0 %v2091_v15 }
  0x7c   :  { %1054 = vperm.xlu0 %1997, %v2321_v16   ;;  %1063 = vperm.xlu1 %1998, %v2339_v20  }
  0x80   :  { %1060 = vperm.xlu0 %1997, %v2327_v17   ;;  %1069 = vperm.xlu1 %1998, %v2352_v23  }
  0x82   :  { %883 = vmatmul.mubr.bf16.gmra.mrb[28].mxu1 %v2093_v24  ;;  %980 = vmatmul.mubr.bf16.gmra.mrb[28].mxu0 %v2094_v27 }
  0x83   :  { %890 = vmatprep.mubr.bf16.mxu1 %v2095_v28  ;;  %987 = vmatprep.mubr.bf16.mxu0 %v2097_v29 }
  0x84   :  { %1066 = vperm.xlu0 %1997, %v2347_v22   ;;  %1075 = vperm.xlu1 %1998, %v2366_v31  }
  0x88   :  { %1072 = vperm.xlu0 %1997, %v2361_v30   ;;  %1081 = vperm.xlu1 %1998, %v2380_v35  }
  0x8a   :  { %891 = vmatmul.mubr.bf16.gmra.mrb[32].mxu1 %v2099_v36  ;;  %988 = vmatmul.mubr.bf16.gmra.mrb[32].mxu0 %v2100_v39 }
  0x8b   :  { %898 = vmatprep.mubr.bf16.mxu1 %v2101_v40  ;;  %995 = vmatprep.mubr.bf16.mxu0 %v2103_v41 }
  0x8c   :  { %1078 = vperm.xlu0 %1997, %v2375_v34   ;;  %1087 = vperm.xlu1 %1998, %v1032_v43  }
  0x90   :  { %1084 = vperm.xlu0 %1997, %v2389_v42   ;;  %1093 = vperm.xlu1 %1998, %v1034_v47  }
  0x92   :  { %899 = vmatmul.mubr.bf16.gmra.mrb[36].mxu1 %v2105_v48  ;;  %996 = vmatmul.mubr.bf16.gmra.mrb[36].mxu0 %v2106_v51 }
  0x93   :  { %906 = vmatprep.mubr.bf16.mxu1 %v2107_v52  ;;  %1003 = vmatprep.mubr.bf16.mxu0 %v2109_v53 }
  0x94   :  { %1090 = vperm.xlu0 %1997, %v1033_v46   ;;  %1099 = vperm.xlu1 %1998, %v1036_v55  }
  0x98   :  { %1096 = vperm.xlu0 %1997, %v1035_v54   ;;  %v1227_v54 = vlaneseq }
  0x9a   :  { %907 = vmatmul.mubr.bf16.gmra.mrb[40].mxu1 %v2111_v60  ;;  %1004 = vmatmul.mubr.bf16.gmra.mrb[40].mxu0 %v2112_v61  ;;  %v2482_v61 = vshrl.u32 %v1227_v54, 7  ;;  %v2488_v0 = vand.u32 127, %v1227_v54 }
  0x9b   :  { %914 = vmatprep.mubr.bf16.mxu1 %v2113_v62  ;;  %1011 = vmatprep.mubr.bf16.mxu0 %v2115_v63 }
  0x9c   :  { %vm1265_vm0 = vcmp.ne.s32.totalorder %v2482_v61, %v2488_v0 }
  0xa2   :  { %915 = vmatmul.mubr.bf16.gmra.mrb[44].mxu1 %v2117_v1  ;;  %1012 = vmatmul.mubr.bf16.gmra.mrb[44].mxu0 %v2118_v2 }
  0xc8   :  { %v2428_v5 = vpop.permute.xlu1 %1144 }
  0xc9   :  { %vm1187_vm11 = vcmp.eq.s32.totalorder %v2428_v5, 1 }
  0xcd   :  { %v2426_v4 = vpop.permute.xlu0 %1138  ;;  %v2432_v7 = vpop.permute.xlu1 %1147 }
  0xce   :  { %vm1185_vm1 = vcmp.eq.s32.totalorder %v2426_v4, 1  ;;  %vm1188_vm15 = vcmp.eq.s32.totalorder %v2432_v7, 1 }
  0xcf   :  { %vm2511_vm5 = vmand %vm1185_vm1, %vm1265_vm0 }
  0xd5   :  { %v2430_v6 = vpop.permute.xlu0 %1141  ;;  %v2436_v9 = vpop.permute.xlu1 %1153 }
  0xd6   :  { %vm1186_vm3 = vcmp.eq.s32.totalorder %v2430_v6, 1 }
  0xdd   :  { %v2434_v8 = vpop.permute.xlu0 %1150  ;;  %v2440_v11 = vpop.permute.xlu1 %1159 }
  0xe5   :  { %v2438_v10 = vpop.permute.xlu0 %1156  ;;  %v2444_v13 = vpop.permute.xlu1 %1165 }
  0xeb   :  { %v2442_v12 = vpop.permute.xlu0 %1162  ;;  %v2456_v27 = vpop.permute.xlu1 %1171 }
  0xef   :  { %v2454_v26 = vpop.permute.xlu0 %1168  ;;  %v2468_v41 = vpop.permute.xlu1 %1177 }
  0xf3   :  { %v2466_v40 = vpop.permute.xlu0 %1174  ;;  %v2480_v56 = vpop.permute.xlu1 %1183 }
  0xf7   :  { %v2478_v55 = vpop.permute.xlu0 %1180 }
 0x11d   :  { %v1794_v14 = vpop.f32.mrb[0].mxu0  ;;  %v1818_v15 = vpop.f32.mrb[0].mxu1 }
 0x11e   :  { %v1795_v16 = vpop.f32.mrb[1].mxu0  ;;  %v1819_v17 = vpop.f32.mrb[1].mxu1 }
 0x11f   :  { %v2446_v18 = vadd.f32 %v1795_v16, %v1794_v14  ;;  %v2448_v19 = vadd.f32 %v1819_v17, %v1818_v15  ;;  %v1797_v20 = vpop.f32.mrb[2].mxu0  ;;  %v1821_v21 = vpop.f32.mrb[2].mxu1 }
 0x120   :  { %v1798_v22 = vpop.f32.mrb[3].mxu0  ;;  %v1822_v23 = vpop.f32.mrb[3].mxu1 }
 0x121   :  { %v2450_v24 = vadd.f32 %v1798_v22, %v1797_v20  ;;  %v2452_v25 = vadd.f32 %v1822_v23, %v1821_v21  ;;  %v1055_v17 = vpop.permute.xlu0 %1054  ;;  %v2497_v20 = vld [vmem:[%s2980_s0] ss:$0 sm:$0xff]  ;;  %v1229_v21 = vadd.s32 8, %v2482_v61  ;;  %v1058_v22 = vpop.permute.xlu1 %1057  ;;  %s2260_s0 = smov [#allocation11]  }
 0x122   :  { %vm1105_vm2 = vcmp.eq.s32.totalorder %v1055_v17, %v2497_v20  ;;  %vm1106_vm4 = vcmp.eq.s32.totalorder %v1058_v22, %v2497_v20  ;;  %s1667_s25 = sshll.u32 %s2260_s0, 4  ;;  %s1668_s25 = int_to_ptr.vmem [resolvable:$true] %s1667_s25 }
 0x123   :  { %vm1266_vm6 = vcmp.ne.s32.totalorder %v1229_v21, %v2488_v0  ;;  %vm1201_vm7 = vmand %vm1185_vm1, %vm1105_vm2  ;;  %s2199_s26 = scalar_lea.vmem %s1668_s25, 16  ;;  %s2203_s27 = scalar_lea.vmem %s1668_s25, 32 }
 0x124   :  { %vm1202_vm8 = vmand %vm1186_vm3, %vm1106_vm4  ;;  %p2200_p2 = scmp.ne.s32.totalorder %s1668_s25, %s2199_s26  ;;  %p2204_p3 = scmp.lt.s32.totalorder %s1668_s25, %s1668_s25 }
 0x125   :  { %v1800_v28 = vpop.f32.mrb[4].mxu0  ;;  %v1824_v29 = vpop.f32.mrb[4].mxu1  ;;  %vm2526_vm9 = vmand %vm1186_vm3, %vm1266_vm6  ;;  %p2205_p4 = scmp.lt.s32.totalorder %s2203_s27, %s2199_s26 }
 0x126   :  { %v1801_v30 = vpop.f32.mrb[5].mxu0  ;;  %v1825_v31 = vpop.f32.mrb[5].mxu1  ;;  %vm2534_vm10 = vmand %vm1201_vm7, %vm1265_vm0  ;;  %vm1189_vm7 = vcmp.eq.s32.totalorder %v2434_v8, 1 }
 0x127   :  { %v2458_v32 = vadd.f32 %v1801_v30, %v1800_v28  ;;  %v2460_v33 = vadd.f32 %v1825_v31, %v1824_v29  ;;  %v1803_v34 = vpop.f32.mrb[6].mxu0  ;;  %v1827_v35 = vpop.f32.mrb[6].mxu1  ;;  %vm2542_vm12 = vmand %vm1202_vm8, %vm1266_vm6  ;;  %p2206_p5 = por %p2205_p4, %p2204_p3 }
 0x128   :  { %v1804_v36 = vpop.f32.mrb[7].mxu0  ;;  %v1828_v37 = vpop.f32.mrb[7].mxu1 }
 0x129   :  { %v2462_v38 = vadd.f32 %v1804_v36, %v1803_v34  ;;  %v2464_v39 = vadd.f32 %v1828_v37, %v1827_v35  ;;  %v1061_v54 = vpop.permute.xlu0 %1060  ;;  %p2207_p6 = pnand %p2206_p5, %p2200_p2 }
 0x12a   :  { %vm1107_vm13 = vcmp.eq.s32.totalorder %v1061_v54, %v2497_v20 }
 0x12b   :  { %vm1203_vm1 = vmand %vm1187_vm11, %vm1107_vm13 }
 0x12d   :  { %v1806_v42 = vpop.f32.mrb[8].mxu0  ;;  %v1830_v43 = vpop.f32.mrb[8].mxu1 }
 0x12e   :  { %v1807_v44 = vpop.f32.mrb[9].mxu0  ;;  %v1831_v45 = vpop.f32.mrb[9].mxu1 }
 0x12f   :  { %v2470_v46 = vadd.f32 %v1807_v44, %v1806_v42  ;;  %v2472_v47 = vadd.f32 %v1831_v45, %v1830_v43  ;;  %v1809_v48 = vpop.f32.mrb[10].mxu0  ;;  %v1833_v49 = vpop.f32.mrb[10].mxu1  ;;  %v1230_v44 = vadd.s32 16, %v2482_v61 }
 0x130   :  { %v1810_v50 = vpop.f32.mrb[11].mxu0  ;;  %v1834_v51 = vpop.f32.mrb[11].mxu1 }
 0x131   :  { %v2474_v52 = vadd.f32 %v1810_v50, %v1809_v48  ;;  %v2476_v53 = vadd.f32 %v1834_v51, %v1833_v49  ;;  %vm1267_vm14 = vcmp.ne.s32.totalorder %v1230_v44, %v2488_v0  ;;  %v1067_v50 = vpop.permute.xlu0 %1066  ;;  %v1233_v44 = vadd.s32 40, %v2482_v61 }
 0x132   :  { %vm2570_vm2 = vmand %vm1187_vm11, %vm1267_vm14  ;;  %vm1190_vm11 = vcmp.eq.s32.totalorder %v2436_v9, 1 }
 0x135   :  { %v1812_v57 = vpop.f32.mrb[12].mxu0  ;;  %v1836_v58 = vpop.f32.mrb[12].mxu1 }
 0x136   :  { %v1813_v59 = vpop.f32.mrb[13].mxu0  ;;  %v1837_v60 = vpop.f32.mrb[13].mxu1 }
 0x137   :  { %v2484_v62 = vadd.f32 %v1813_v59, %v1812_v57  ;;  %v2486_v63 = vadd.f32 %v1837_v60, %v1836_v58  ;;  %v1815_v1 = vpop.f32.mrb[14].mxu0  ;;  %v1839_v2 = vpop.f32.mrb[14].mxu1  ;;  %v1231_v57 = vadd.s32 24, %v2482_v61 }
 0x138   :  { %v1816_v3 = vpop.f32.mrb[15].mxu0  ;;  %v1840_v14 = vpop.f32.mrb[15].mxu1 }
 0x139   :  { %v2490_v15 = vadd.f32 %v1816_v3, %v1815_v1  ;;  %v2492_v16 = vadd.f32 %v1840_v14, %v1839_v2  ;;  %v1064_v58 = vpop.permute.xlu1 %1063  ;;  %vm1268_vm3 = vcmp.ne.s32.totalorder %v1231_v57, %v2488_v0 }
 0x13a   :  { %vm1108_vm0 = vcmp.eq.s32.totalorder %v1064_v58, %v2497_v20  ;;  %vm2593_vm6 = vmand %vm1188_vm15, %vm1268_vm3 }
 0x13b   :  { %vm1204_vm4 = vmand %vm1188_vm15, %vm1108_vm0  ;;  %vm1270_vm15 = vcmp.ne.s32.totalorder %v1233_v44, %v2488_v0 }
 0x13c   :  { %vm2602_vm8 = vmand %vm1204_vm4, %vm1268_vm3  ;;  %vm1191_vm3 = vcmp.eq.s32.totalorder %v2438_v10, 1 }
 0x13d   :  { %v1858_v23 = vpop.f32.mrb[16].mxu1  ;;  %v1922_v28 = vpop.f32.mrb[16].mxu0 }
 0x13e   :  { %v1859_v29 = vpop.f32.mrb[17].mxu1  ;;  %v1923_v30 = vpop.f32.mrb[17].mxu0 }
 0x13f   :  { %v1860_v34 = vadd.f32 %v1859_v29, %v1858_v23  ;;  %v1924_v35 = vadd.f32 %v1923_v30, %v1922_v28  ;;  %v1861_v36 = vpop.f32.mrb[18].mxu1  ;;  %v1925_v37 = vpop.f32.mrb[18].mxu0 }
 0x140   :  { %v1862_v42 = vpop.f32.mrb[19].mxu1  ;;  %v1926_v43 = vpop.f32.mrb[19].mxu0 }
 0x141   :  { %v861_v45 = vadd.f32 %v1860_v34, %v2446_v18  ;;  %v1863_v48 = vadd.f32 %v1862_v42, %v1861_v36  ;;  %v1927_v49 = vadd.f32 %v1926_v43, %v1925_v37  ;;  %v1232_v37 = vadd.s32 32, %v2482_v61 }
 0x143   :  { %v958_v51 = vadd.f32 %v1924_v35, %v861_v45  ;;  %v864_v4 = vadd.f32 %v1863_v48, %v2450_v24  ;;  %v1073_v48 = vpop.permute.xlu0 %1072 }
 0x145   :  { %v961_v24 = vadd.f32 %v1927_v49, %v864_v4  ;;  %v1864_v59 = vpop.f32.mrb[20].mxu1  ;;  %v1928_v60 = vpop.f32.mrb[20].mxu0  ;;  %v2551_v1 = vsel %vm2511_vm5, %v958_v51, -inf  ;;  %v1436_v2 = vsel %vm2534_vm10, %v958_v51, 0.0  ;;  %vm2585_vm5 = vmand %vm1203_vm1, %vm1267_vm14  ;;  %vm1269_vm10 = vcmp.ne.s32.totalorder %v1232_v37, %v2488_v0 }
 0x146   :  { %v1865_v3 = vpop.f32.mrb[21].mxu1  ;;  %v1929_v14 = vpop.f32.mrb[21].mxu0  ;;  %vm2635_vm14 = vmand %vm1189_vm7, %vm1269_vm10  ;;  %v1235_v37 = vadd.s32 56, %v2482_v61 }
 0x147   :  { %v2558_v17 = vsel %vm2526_vm9, %v961_v24, -inf  ;;  %v1437_v21 = vsel %vm2542_vm12, %v961_v24, 0.0  ;;  %v1866_v22 = vadd.f32 %v1865_v3, %v1864_v59  ;;  %v1930_v23 = vadd.f32 %v1929_v14, %v1928_v60  ;;  %v1867_v28 = vpop.f32.mrb[22].mxu1  ;;  %v1931_v29 = vpop.f32.mrb[22].mxu0 }
 0x148   :  { %v1330_v31 = vmax.f32 %v2551_v1, %v2558_v17  ;;  %v1452_v34 = vadd.f32 %v1437_v21, %v1436_v2  ;;  %v1868_v35 = vpop.f32.mrb[23].mxu1  ;;  %v1932_v36 = vpop.f32.mrb[23].mxu0  ;;  %vm1109_vm9 = vcmp.eq.s32.totalorder %v1067_v50, %v2497_v20 }
 0x149   :  { %v869_v42 = vadd.f32 %v1866_v22, %v2458_v32  ;;  %v1869_v43 = vadd.f32 %v1868_v35, %v1867_v28  ;;  %v1933_v45 = vadd.f32 %v1932_v36, %v1931_v29  ;;  %v1070_v4 = vpop.permute.xlu1 %1069  ;;  %vm2627_vm13 = vmand %vm1189_vm7, %vm1109_vm9  ;;  %v1234_v35 = vadd.s32 48, %v2482_v61 }
 0x14a   :  { %vm1110_vm12 = vcmp.eq.s32.totalorder %v1070_v4, %v2497_v20  ;;  %vm2651_vm1 = vmand %vm2627_vm13, %vm1269_vm10  ;;  %vm1192_vm7 = vcmp.eq.s32.totalorder %v2440_v11, 1  ;;  %v1079_v11 = vpop.permute.xlu0 %1078 }
 0x14b   :  { %v966_v32 = vadd.f32 %v1930_v23, %v869_v42  ;;  %v872_v49 = vadd.f32 %v1869_v43, %v2462_v38  ;;  %vm1206_vm0 = vmand %vm1190_vm11, %vm1110_vm12 }
 0x14c   :  { %vm2668_vm4 = vmand %vm1206_vm0, %vm1270_vm15 }
 0x14d   :  { %v2610_v7 = vsel %vm2570_vm2, %v966_v32, -inf  ;;  %v969_v38 = vadd.f32 %v1933_v45, %v872_v49  ;;  %v1438_v18 = vsel %vm2585_vm5, %v966_v32, 0.0  ;;  %v1870_v54 = vpop.f32.mrb[24].mxu1  ;;  %v1934_v6 = vpop.f32.mrb[24].mxu0  ;;  %vm2659_vm2 = vmand %vm1190_vm11, %vm1270_vm15  ;;  %vm1111_vm5 = vcmp.eq.s32.totalorder %v1073_v48, %v2497_v20 }
 0x14e   :  { %v1331_v57 = vmax.f32 %v2610_v7, %v1330_v31  ;;  %v1453_v58 = vadd.f32 %v1452_v34, %v1438_v18  ;;  %v1871_v24 = vpop.f32.mrb[25].mxu1  ;;  %v1935_v59 = vpop.f32.mrb[25].mxu0  ;;  %vm2693_vm9 = vmand %vm1191_vm3, %vm1111_vm5  ;;  %vm1272_vm11 = vcmp.ne.s32.totalorder %v1235_v37, %v2488_v0 }
 0x14f   :  { %v2619_v60 = vsel %vm2593_vm6, %v969_v38, -inf  ;;  %v1439_v2 = vsel %vm2602_vm8, %v969_v38, 0.0  ;;  %v1872_v14 = vadd.f32 %v1871_v24, %v1870_v54  ;;  %v1936_v21 = vadd.f32 %v1935_v59, %v1934_v6  ;;  %v1873_v22 = vpop.f32.mrb[26].mxu1  ;;  %v1937_v23 = vpop.f32.mrb[26].mxu0 }
 0x150   :  { %v1332_v29 = vmax.f32 %v2619_v60, %v1331_v57  ;;  %v1454_v30 = vadd.f32 %v1453_v58, %v1439_v2  ;;  %v1874_v31 = vpop.f32.mrb[27].mxu1  ;;  %v1938_v34 = vpop.f32.mrb[27].mxu0  ;;  %vm1271_vm6 = vcmp.ne.s32.totalorder %v1234_v35, %v2488_v0  ;;  %v2732_v35 = vadd.s32 80, %v2482_v61 }
 0x151   :  { %v877_v8 = vadd.f32 %v1872_v14, %v2470_v46  ;;  %v1875_v36 = vadd.f32 %v1874_v31, %v1873_v22  ;;  %v1939_v42 = vadd.f32 %v1938_v34, %v1937_v23  ;;  %v1076_v49 = vpop.permute.xlu1 %1075  ;;  %vm2701_vm10 = vmand %vm1191_vm3, %vm1271_vm6  ;;  %vm1194_vm3 = vcmp.eq.s32.totalorder %v2444_v13, 1 }
 0x152   :  { %vm1112_vm8 = vcmp.eq.s32.totalorder %v1076_v49, %v2497_v20  ;;  %vm2717_vm13 = vmand %vm2693_vm9, %vm1271_vm6  ;;  %vm1275_vm9 = vcmp.ne.s32.totalorder %v2732_v35, %v2488_v0 }
 0x153   :  { %v974_v5 = vadd.f32 %v1936_v21, %v877_v8  ;;  %v880_v46 = vadd.f32 %v1875_v36, %v2474_v52  ;;  %vm1208_vm12 = vmand %vm1192_vm7, %vm1112_vm8 }
 0x154   :  { %vm2736_vm15 = vmand %vm1208_vm12, %vm1272_vm11  ;;  %vm1195_vm12 = vcmp.eq.s32.totalorder %v2454_v26, 1 }
 0x155   :  { %v2676_v9 = vsel %vm2635_vm14, %v974_v5, -inf  ;;  %v1440_v52 = vsel %vm2651_vm1, %v974_v5, 0.0  ;;  %v977_v50 = vadd.f32 %v1939_v42, %v880_v46  ;;  %v1876_v51 = vpop.f32.mrb[28].mxu1  ;;  %v1940_v4 = vpop.f32.mrb[28].mxu0  ;;  %vm2725_vm14 = vmand %vm1192_vm7, %vm1272_vm11  ;;  %v1237_v42 = vadd.s32 72, %v2482_v61 }
 0x156   :  { %v1333_v44 = vmax.f32 %v2676_v9, %v1332_v29  ;;  %v1455_v38 = vadd.f32 %v1454_v30, %v1440_v52  ;;  %v1877_v18 = vpop.f32.mrb[29].mxu1  ;;  %v1941_v54 = vpop.f32.mrb[29].mxu0  ;;  %v1236_v29 = vadd.s32 64, %v2482_v61  ;;  %vm1193_vm1 = vcmp.eq.s32.totalorder %v2442_v12, 1 }
 0x157   :  { %v2685_v6 = vsel %vm2659_vm2, %v977_v50, -inf  ;;  %v1441_v57 = vsel %vm2668_vm4, %v977_v50, 0.0  ;;  %v1878_v24 = vadd.f32 %v1877_v18, %v1876_v51  ;;  %v1942_v59 = vadd.f32 %v1941_v54, %v1940_v4  ;;  %v1879_v2 = vpop.f32.mrb[30].mxu1  ;;  %v1943_v3 = vpop.f32.mrb[30].mxu0 }
 0x158   :  { %v1334_v21 = vmax.f32 %v2685_v6, %v1333_v44  ;;  %v1456_v22 = vadd.f32 %v1455_v38, %v1441_v57  ;;  %v1880_v23 = vpop.f32.mrb[31].mxu1  ;;  %v1944_v28 = vpop.f32.mrb[31].mxu0  ;;  %vm1273_vm0 = vcmp.ne.s32.totalorder %v1236_v29, %v2488_v0  ;;  %vm1113_vm2 = vcmp.eq.s32.totalorder %v1079_v11, %v2497_v20 }
 0x159   :  { %v885_v10 = vadd.f32 %v1878_v24, %v2484_v62  ;;  %v1881_v30 = vadd.f32 %v1880_v23, %v1879_v2  ;;  %v1945_v31 = vadd.f32 %v1944_v28, %v1943_v3  ;;  %v1082_v45 = vpop.permute.xlu1 %1081  ;;  %vm1209_vm5 = vmand %vm1193_vm1, %vm1113_vm2  ;;  %vm1274_vm7 = vcmp.ne.s32.totalorder %v1237_v42, %v2488_v0  ;;  %v1085_v12 = vpop.permute.xlu0 %1084 }
 0x15a   :  { %vm1114_vm4 = vcmp.eq.s32.totalorder %v1082_v45, %v2497_v20  ;;  %vm1289_vm6 = vmand %vm1193_vm1, %vm1273_vm0  ;;  %v1239_v28 = vadd.s32 88, %v2482_v61 }
 0x15b   :  { %v982_v36 = vadd.f32 %v1942_v59, %v885_v10  ;;  %v888_v62 = vadd.f32 %v1881_v30, %v2490_v15  ;;  %vm2771_vm8 = vmand %vm1194_vm3, %vm1114_vm4 }
 0x15c   :  { %vm1290_vm11 = vmand %vm1194_vm3, %vm1274_vm7  ;;  %vm1276_vm3 = vcmp.ne.s32.totalorder %v1239_v28, %v2488_v0 }
 0x15d   :  { %v2743_v5 = vsel %vm2701_vm10, %v982_v36, -inf  ;;  %v1442_v15 = vsel %vm2717_vm13, %v982_v36, 0.0  ;;  %v985_v46 = vadd.f32 %v1945_v31, %v888_v62  ;;  %v1882_v48 = vpop.f32.mrb[32].mxu1  ;;  %v1946_v32 = vpop.f32.mrb[32].mxu0  ;;  %vm1305_vm10 = vmand %vm1209_vm5, %vm1273_vm0 }
 0x15e   :  { %v1335_v37 = vmax.f32 %v2743_v5, %v1334_v21  ;;  %v1457_v49 = vadd.f32 %v1456_v22, %v1442_v15  ;;  %v1883_v52 = vpop.f32.mrb[33].mxu1  ;;  %v1947_v50 = vpop.f32.mrb[33].mxu0  ;;  %vm1306_vm13 = vmand %vm2771_vm8, %vm1274_vm7  ;;  %vm1197_vm8 = vcmp.eq.s32.totalorder %v2466_v40, 1 }
 0x15f   :  { %v2752_v51 = vsel %vm2725_vm14, %v985_v46, -inf  ;;  %v1443_v4 = vsel %vm2736_vm15, %v985_v46, 0.0  ;;  %v1884_v44 = vadd.f32 %v1883_v52, %v1882_v48  ;;  %v1948_v38 = vadd.f32 %v1947_v50, %v1946_v32  ;;  %v1885_v18 = vpop.f32.mrb[34].mxu1  ;;  %v1949_v54 = vpop.f32.mrb[34].mxu0  ;;  %vm1291_vm2 = vmand %vm1195_vm12, %vm1275_vm9 }
 0x160   :  { %v1336_v57 = vmax.f32 %v2752_v51, %v1335_v37  ;;  %v1458_v58 = vadd.f32 %v1457_v49, %v1443_v4  ;;  %v1886_v24 = vpop.f32.mrb[35].mxu1  ;;  %v1950_v59 = vpop.f32.mrb[35].mxu0  ;;  %vm1115_vm14 = vcmp.eq.s32.totalorder %v1085_v12, %v2497_v20  ;;  %vm1196_vm15 = vcmp.eq.s32.totalorder %v2456_v27, 1 }
 0x161   :  { %v893_v2 = vadd.f32 %v1884_v44, %v2448_v19  ;;  %v1887_v3 = vadd.f32 %v1886_v24, %v1885_v18  ;;  %v1951_v14 = vadd.f32 %v1950_v59, %v1949_v54  ;;  %v1088_v19 = vpop.permute.xlu1 %1087  ;;  %v1240_v49 = vadd.s32 96, %v2482_v61  ;;  %vm1211_vm1 = vmand %vm1195_vm12, %vm1115_vm14 }
 0x162   :  { %vm1116_vm0 = vcmp.eq.s32.totalorder %v1088_v19, %v2497_v20  ;;  %v2820_v54 = vadd.s32 112, %v2482_v61  ;;  %vm1307_vm5 = vmand %vm1211_vm1, %vm1275_vm9 }
 0x163   :  { %v990_v22 = vadd.f32 %v1948_v38, %v893_v2  ;;  %v896_v23 = vadd.f32 %v1887_v3, %v2452_v25  ;;  %vm2813_vm4 = vmand %vm1196_vm15, %vm1116_vm0  ;;  %vm1277_vm7 = vcmp.ne.s32.totalorder %v1240_v49, %v2488_v0 }
 0x164   :  { %vm1308_vm9 = vmand %vm2813_vm4, %vm1276_vm3  ;;  %vm1279_vm1 = vcmp.ne.s32.totalorder %v2820_v54, %v2488_v0  ;;  %vm1199_vm4 = vcmp.eq.s32.totalorder %v2478_v55, 1 }
 0x165   :  { %v2785_v10 = vsel %vm1289_vm6, %v990_v22, -inf  ;;  %v1444_v30 = vsel %vm1305_vm10, %v990_v22, 0.0  ;;  %v993_v31 = vadd.f32 %v1951_v14, %v896_v23  ;;  %v1888_v25 = vpop.f32.mrb[36].mxu1  ;;  %v1952_v34 = vpop.f32.mrb[36].mxu0  ;;  %vm1292_vm6 = vmand %vm1196_vm15, %vm1276_vm3 }
 0x166   :  { %v1337_v13 = vmax.f32 %v2785_v10, %v1336_v57  ;;  %v1459_v29 = vadd.f32 %v1458_v58, %v1444_v30  ;;  %v1889_v8 = vpop.f32.mrb[37].mxu1  ;;  %v1953_v36 = vpop.f32.mrb[37].mxu0  ;;  %vm1293_vm14 = vmand %vm1197_vm8, %vm1277_vm7 }
 0x167   :  { %v2794_v62 = vsel %vm1290_vm11, %v993_v31, -inf  ;;  %v1445_v43 = vsel %vm1306_vm13, %v993_v31, 0.0  ;;  %v1890_v45 = vadd.f32 %v1889_v8, %v1888_v25  ;;  %v1954_v11 = vadd.f32 %v1953_v36, %v1952_v34  ;;  %v1891_v15 = vpop.f32.mrb[38].mxu1  ;;  %v1955_v46 = vpop.f32.mrb[38].mxu0 }
 0x168   :  { %v1338_v42 = vmax.f32 %v2794_v62, %v1337_v13  ;;  %v1460_v48 = vadd.f32 %v1459_v29, %v1445_v43  ;;  %v1892_v32 = vpop.f32.mrb[39].mxu1  ;;  %v1956_v37 = vpop.f32.mrb[39].mxu0  ;;  %vm1198_vm11 = vcmp.eq.s32.totalorder %v2468_v41, 1 }
 0x169   :  { %v901_v52 = vadd.f32 %v1890_v45, %v2460_v33  ;;  %v1893_v50 = vadd.f32 %v1892_v32, %v1891_v15  ;;  %v1957_v4 = vadd.f32 %v1956_v37, %v1955_v46  ;;  %v1241_v33 = vadd.s32 104, %v2482_v61  ;;  %v1094_v26 = vpop.permute.xlu1 %1093  ;;  %v1091_v57 = vpop.permute.xlu0 %1090 }
 0x16a   :  { %vm1117_vm10 = vcmp.eq.s32.totalorder %v1091_v57, %v2497_v20  ;;  %vm1118_vm12 = vcmp.eq.s32.totalorder %v1094_v26, %v2497_v20 }
 0x16b   :  { %v998_v38 = vadd.f32 %v1954_v11, %v901_v52  ;;  %v904_v18 = vadd.f32 %v1893_v50, %v2464_v39  ;;  %vm1213_vm13 = vmand %vm1197_vm8, %vm1117_vm10  ;;  %vm1278_vm15 = vcmp.ne.s32.totalorder %v1241_v33, %v2488_v0 }
 0x16c   :  { %vm2856_vm0 = vmand %vm1198_vm11, %vm1118_vm12 }
 0x16d   :  { %v2830_v58 = vsel %vm1291_vm2, %v998_v38, -inf  ;;  %v1446_v39 = vsel %vm1307_vm5, %v998_v38, 0.0  ;;  %v1001_v24 = vadd.f32 %v1957_v4, %v904_v18  ;;  %v1894_v59 = vpop.f32.mrb[40].mxu1  ;;  %v1958_v2 = vpop.f32.mrb[40].mxu0  ;;  %vm1309_vm2 = vmand %vm1213_vm13, %vm1277_vm7  ;;  %vm1200_vm7 = vcmp.eq.s32.totalorder %v2480_v56, 1 }
 0x16e   :  { %v1339_v27 = vmax.f32 %v2830_v58, %v1338_v42  ;;  %v1461_v35 = vadd.f32 %v1460_v48, %v1446_v39  ;;  %v1895_v3 = vpop.f32.mrb[41].mxu1  ;;  %v1959_v14 = vpop.f32.mrb[41].mxu0  ;;  %vm1294_vm3 = vmand %vm1198_vm11, %vm1278_vm15 }
 0x16f   :  { %v2839_v21 = vsel %vm1292_vm6, %v1001_v24, -inf  ;;  %v1447_v22 = vsel %vm1308_vm9, %v1001_v24, 0.0  ;;  %v1896_v23 = vadd.f32 %v1895_v3, %v1894_v59  ;;  %v1960_v19 = vadd.f32 %v1959_v14, %v1958_v2  ;;  %v1897_v12 = vpop.f32.mrb[42].mxu1  ;;  %v1961_v30 = vpop.f32.mrb[42].mxu0  ;;  %vm1310_vm5 = vmand %vm2856_vm0, %vm1278_vm15 }
 0x170   :  { %v1342_v28 = vmax.f32 %v2839_v21, %v1339_v27  ;;  %v1462_v31 = vadd.f32 %v1461_v35, %v1447_v22  ;;  %v1898_v25 = vpop.f32.mrb[43].mxu1  ;;  %v1962_v34 = vpop.f32.mrb[43].mxu0  ;;  %vm1295_vm10 = vmand %vm1199_vm4, %vm1279_vm1 }
 0x171   :  { %v909_v13 = vadd.f32 %v1896_v23, %v2472_v47  ;;  %v1899_v29 = vadd.f32 %v1898_v25, %v1897_v12  ;;  %v1963_v8 = vadd.f32 %v1962_v34, %v1961_v30  ;;  %v1097_v43 = vpop.permute.xlu0 %1096  ;;  %v1100_v40 = vpop.permute.xlu1 %1099  ;;  %v1243_v47 = vadd.s32 120, %v2482_v61 }
 0x172   :  { %vm1119_vm6 = vcmp.eq.s32.totalorder %v1097_v43, %v2497_v20  ;;  %vm1120_vm8 = vcmp.eq.s32.totalorder %v1100_v40, %v2497_v20  ;;  %v1360_v43 = vsub.s32 0, %v2482_v61 }
 0x173   :  { %v1006_v45 = vadd.f32 %v1960_v19, %v909_v13  ;;  %v912_v11 = vadd.f32 %v1899_v29, %v2476_v53  ;;  %vm1215_vm9 = vmand %vm1199_vm4, %vm1119_vm6  ;;  %vm1280_vm11 = vcmp.ne.s32.totalorder %v1243_v47, %v2488_v0  ;;  %v2909_v29 = vld [vmem:[#allocation2] sm:$0x1] }
 0x174   :  { %vm1216_vm12 = vmand %vm1200_vm7, %vm1120_vm8 }
 0x175   :  { %v2870_v15 = vsel %vm1293_vm14, %v1006_v45, -inf  ;;  %v1448_v46 = vsel %vm1309_vm2, %v1006_v45, 0.0  ;;  %v1009_v42 = vadd.f32 %v1963_v8, %v912_v11  ;;  %v1900_v48 = vpop.f32.mrb[44].mxu1  ;;  %v1964_v53 = vpop.f32.mrb[44].mxu0  ;;  %vm1311_vm13 = vmand %vm1215_vm9, %vm1279_vm1  ;;  %v1435_v8 = vld [vmem:[#allocation4] sm:$0x1] }
 0x176   :  { %v1340_v41 = vmax.f32 %v2870_v15, %v1342_v28  ;;  %v1463_v32 = vadd.f32 %v1462_v31, %v1448_v46  ;;  %v1901_v37 = vpop.f32.mrb[45].mxu1  ;;  %v1965_v49 = vpop.f32.mrb[45].mxu0  ;;  %vm1296_vm14 = vmand %vm1200_vm7, %vm1280_vm11 }
 0x177   :  { %v2879_v52 = vsel %vm1294_vm3, %v1009_v42, -inf  ;;  %v1449_v50 = vsel %vm1310_vm5, %v1009_v42, 0.0  ;;  %v1902_v4 = vadd.f32 %v1901_v37, %v1900_v48  ;;  %v1966_v44 = vadd.f32 %v1965_v49, %v1964_v53  ;;  %v1903_v38 = vpop.f32.mrb[46].mxu1  ;;  %v1967_v18 = vpop.f32.mrb[46].mxu0  ;;  %vm1312_vm15 = vmand %vm1216_vm12, %vm1280_vm11 }
 0x178   :  { %v1341_v33 = vmax.f32 %v2879_v52, %v1340_v41  ;;  %v1464_v26 = vadd.f32 %v1463_v32, %v1449_v50  ;;  %v1904_v57 = vpop.f32.mrb[47].mxu1  ;;  %v1968_v39 = vpop.f32.mrb[47].mxu0 }
 0x179   :  { %v917_v24 = vadd.f32 %v1902_v4, %v2486_v63  ;;  %v1905_v59 = vadd.f32 %v1904_v57, %v1903_v38  ;;  %v1969_v2 = vadd.f32 %v1968_v39, %v1967_v18 }
 0x17b   :  { %v1014_v27 = vadd.f32 %v1966_v44, %v917_v24  ;;  %v920_v20 = vadd.f32 %v1905_v59, %v2492_v16 }
 0x17d   :  { %v2903_v63 = vsel %vm1295_vm10, %v1014_v27, -inf  ;;  %v1450_v35 = vsel %vm1311_vm13, %v1014_v27, 0.0  ;;  %v1017_v55 = vadd.f32 %v1969_v2, %v920_v20 }
 0x17e   :  { %v1343_v3 = vmax.f32 %v2903_v63, %v1341_v33  ;;  %v1465_v14 = vadd.f32 %v1464_v26, %v1450_v35 }
 0x17f   :  { %v2906_v22 = vsel %vm1296_vm14, %v1017_v55, -inf  ;;  %v1451_v23 = vsel %vm1312_vm15, %v1017_v55, 0.0 }
 0x180   :  { %v1344_v16 = vmax.f32 %v2906_v22, %v1343_v3  ;;  %v1466_v19 = vadd.f32 %v1465_v14, %v1451_v23 }
 0x182   :  { %v1345_v12 = vrot.slane %v1344_v16, 4  ;;  %v1467_v0 = vrot.slane %v1466_v19, 4 }
 0x184   :  { %v1346_v54 = vmax.f32 %v1344_v16, %v1345_v12  ;;  %v1468_v30 = vadd.f32 %v1467_v0, %v1466_v19 }
 0x186   :  { %v1347_v56 = vrot.slane %v1346_v54, 2  ;;  %v1469_v28 = vrot.slane %v1468_v30, 2 }
 0x188   :  { %v1348_v31 = vmax.f32 %v1346_v54, %v1347_v56  ;;  %v1470_v25 = vadd.f32 %v1469_v28, %v1468_v30 }
 0x18a   :  { %v1349_v34 = vrot.slane %v1348_v31, 1  ;;  %v1471_v13 = vrot.slane %v1470_v25, 1 }
 0x18c   :  { %v1350_v36 = vmax.f32 %v1348_v31, %v1349_v34  ;;  %v1472_v45 = vadd.f32 %v1471_v13, %v1470_v25 }
 0x18e   :  { %v2913_v11 = vmax.f32 %v2909_v29, %v1350_v36  ;;  %v1473_v40 = vadd.f32 %v1472_v45, %v1435_v8 }
 0x190   :  { %v2916_v47 = vrot.slane %v2913_v11, %v1360_v43  ;;  %1434 = vst [vmem:[#allocation2] sm:$0x1] %v2913_v11  ;;  %1474 = vst [vmem:[#allocation4] sm:$0x1] %v1473_v40 }
 0x192   :  { %v1363_v46 = vsub.f32 %v2551_v1, %v2916_v47  ;;  %v1364_v42 = vsub.f32 %v2558_v17, %v2916_v47  ;;  %v1365_v61 = vsub.f32 %v2610_v7, %v2916_v47  ;;  %v1366_v48 = vsub.f32 %v2619_v60, %v2916_v47 }
 0x193   :  { %v1367_v53 = vsub.f32 %v2676_v9, %v2916_v47  ;;  %v1368_v41 = vsub.f32 %v2685_v6, %v2916_v47  ;;  %v1369_v32 = vsub.f32 %v2743_v5, %v2916_v47  ;;  %v1370_v1 = vsub.f32 %v2752_v51, %v2916_v47 }
 0x194   :  { %v1371_v17 = vsub.f32 %v2785_v10, %v2916_v47  ;;  %v1372_v7 = vsub.f32 %v2794_v62, %v2916_v47  ;;  %v1373_v60 = vsub.f32 %v2830_v58, %v2916_v47  ;;  %v1374_v9 = vsub.f32 %v2839_v21, %v2916_v47 }
 0x195   :  { %v1375_v6 = vsub.f32 %v2870_v15, %v2916_v47  ;;  %v1376_v5 = vsub.f32 %v2879_v52, %v2916_v47  ;;  %v1377_v51 = vsub.f32 %v2903_v63, %v2916_v47  ;;  %v1378_v10 = vsub.f32 %v2906_v22, %v2916_v47 }
 0x196   :  { %v1379_v37 = vmul.f32 1.442695, %v1363_v46  ;;  %v1381_v62 = vmul.f32 1.442695, %v1364_v42  ;;  %v1383_v49 = vmul.f32 1.442695, %v1365_v61 }
 0x197   :  { %v1385_v58 = vmul.f32 1.442695, %v1366_v48  ;;  %v1387_v21 = vmul.f32 1.442695, %v1367_v53  ;;  %v1649_v15 = vld [vmem:[#allocation4] sm:$0x1] }
 0x198   :  { %2119 = vpow2.f32 %v1379_v37  ;;  %v1389_v52 = vmul.f32 1.442695, %v1368_v41  ;;  %1650 = vst [vmem:[#allocation11] sm:$0x1] %v1649_v15 }
 0x199   :  { %2121 = vpow2.f32 %v1381_v62 }
 0x19a   :  { %2123 = vpow2.f32 %v1383_v49 }
 0x19b   :  { %2125 = vpow2.f32 %v1385_v58 }
 0x19c   :  { %2210 = shalt.err (!%p2207_p6)
}
 0x19d   :  { %s2211_s30 = scalar_lea.hbm %s2985_s5, 16 }
 0x19e   :  { %p2212_p7 = scmp.ne.s32.totalorder %s2985_s5, %s2211_s30  ;;  %p2215_p8 = scmp.lt.u32.totalorder %s2211_s30, %s2985_s5 }
 0x1a0   :  { %p2217_p9 = pnand %p2215_p8, %p2212_p7 }
 0x1a2   :  { %2220 = shalt.err (!%p2217_p9)
}
 0x1a3   :  { %1670 = dma.vmem_to_hbm [thread:$0]  %s1668_s25, 16, %s2985_s5, [#allocation12]   ;;  %2127 = vpow2.f32 %v1387_v21  ;;  %v1391_v50 = vmul.f32 1.442695, %v1369_v32  ;;  %v1393_v4 = vmul.f32 1.442695, %v1370_v1  ;;  %v2120_v44 = vpop.eup %2119  ;;  %v1352_v8 = vsub.f32 %v2909_v29, %v2913_v11 }
 0x1a4   :  { %2129 = vpow2.f32 %v1389_v52  ;;  %v2122_v38 = vpop.eup %2121  ;;  %v1395_v18 = vmul.f32 1.442695, %v1371_v17  ;;  %v1397_v57 = vmul.f32 1.442695, %v1372_v7  ;;  %v1399_v59 = vmul.f32 1.442695, %v1373_v60 }
 0x1a5   :  { %2131 = vpow2.f32 %v1391_v50  ;;  %v1411_v33 = vadd.f32 %v2122_v38, %v2120_v44  ;;  %v2124_v26 = vpop.eup %2123  ;;  %v1401_v20 = vmul.f32 1.442695, %v1374_v9  ;;  %v1403_v55 = vmul.f32 1.442695, %v1375_v6  ;;  %v1355_v7 = vld [vmem:[#allocation3] sm:$0x1] }
 0x1a6   :  { %2133 = vpow2.f32 %v1393_v4  ;;  %v2126_v24 = vpop.eup %2125  ;;  %v1405_v23 = vmul.f32 1.442695, %v1376_v5  ;;  %v1407_v12 = vmul.f32 1.442695, %v1377_v51  ;;  %v1409_v30 = vmul.f32 1.442695, %v1378_v10 }
 0x1a7   :  { %v1412_v39 = vadd.f32 %v2124_v26, %v1411_v33  ;;  %2135 = vpow2.f32 %v1395_v18  ;;  %v1353_v46 = vmul.f32 1.442695, %v1352_v8  ;;  %s2261_s5 = smov [#allocation10]   ;;  %v1643_v10 = vld [vmem:[#allocation2] sm:$0x1] }
 0x1a8   :  { %2137 = vpow2.f32 %v1397_v57  ;;  %s1657_s12 = sshll.u32 %s2261_s5, 4  ;;  %s1658_s12 = int_to_ptr.vmem [resolvable:$true] %s1657_s12 }
 0x1a9   :  { %v1413_v2 = vadd.f32 %v2126_v24, %v1412_v39  ;;  %2139 = vpow2.f32 %v1399_v59  ;;  %s2221_s13 = scalar_lea.vmem %s1658_s12, 16  ;;  %s2225_s14 = scalar_lea.vmem %s1658_s12, 32 }
 0x1aa   :  { %2141 = vpow2.f32 %v1401_v20  ;;  %p2222_p10 = scmp.ne.s32.totalorder %s1658_s12, %s2221_s13  ;;  %p2226_p11 = scmp.lt.s32.totalorder %s1658_s12, %s1658_s12 }
 0x1ab   :  { %2143 = vpow2.f32 %v1403_v55  ;;  %p2227_p12 = scmp.lt.s32.totalorder %s2225_s14, %s2221_s13 }
 0x1ac   :  { %2145 = vpow2.f32 %v1405_v23 }
 0x1ad   :  { %v2128_v27 = vpop.eup %2127  ;;  %2147 = vpow2.f32 %v1407_v12  ;;  %p2228_p13 = por %p2227_p12, %p2226_p11 }
 0x1ae   :  { %v1414_v63 = vadd.f32 %v2128_v27, %v1413_v2  ;;  %v2130_v35 = vpop.eup %2129  ;;  %2149 = vpow2.f32 %v1409_v30 }
 0x1af   :  { %v2132_v14 = vpop.eup %2131  ;;  %2151 = vpow2.f32 %v1353_v46  ;;  %p2229_p0 = pnand %p2228_p13, %p2222_p10 }
 0x1b0   :  { %v1415_v3 = vadd.f32 %v2130_v35, %v1414_v63  ;;  %v2134_v19 = vpop.eup %2133 }
 0x1b1   :  { %v2136_v54 = vpop.eup %2135 }
 0x1b2   :  { %v1416_v16 = vadd.f32 %v2132_v14, %v1415_v3  ;;  %v2138_v28 = vpop.eup %2137 }
 0x1b3   :  { %v2140_v25 = vpop.eup %2139 }
 0x1b4   :  { %v1417_v0 = vadd.f32 %v2134_v19, %v1416_v16  ;;  %v2142_v13 = vpop.eup %2141 }
 0x1b5   :  { %v2144_v43 = vpop.eup %2143 }
 0x1b6   :  { %v1418_v56 = vadd.f32 %v2136_v54, %v1417_v0  ;;  %v2146_v40 = vpop.eup %2145 }
 0x1b7   :  { %v2148_v61 = vpop.eup %2147 }
 0x1b8   :  { %v1419_v31 = vadd.f32 %v2138_v28, %v1418_v56  ;;  %v2150_v47 = vpop.eup %2149 }
 0x1b9   :  { %v2152_v17 = vpop.eup %2151 }
 0x1ba   :  { %v1420_v34 = vadd.f32 %v2140_v25, %v1419_v31  ;;  %v1356_v9 = vmul.f32 %v2152_v17, %v1355_v7 }
 0x1bc   :  { %v1421_v36 = vadd.f32 %v2142_v13, %v1420_v34 }
 0x1be   :  { %v1422_v45 = vadd.f32 %v2144_v43, %v1421_v36 }
 0x1c0   :  { %v1423_v42 = vadd.f32 %v2146_v40, %v1422_v45 }
 0x1c2   :  { %v1424_v22 = vadd.f32 %v2148_v61, %v1423_v42 }
 0x1c4   :  { %v1425_v48 = vadd.f32 %v2150_v47, %v1424_v22 }
 0x1c6   :  { %v1426_v53 = vrot.slane %v1425_v48, 4 }
 0x1c8   :  { %v1427_v41 = vadd.f32 %v1426_v53, %v1425_v48 }
 0x1ca   :  { %v1428_v32 = vrot.slane %v1427_v41, 2 }
 0x1cc   :  { %v1429_v1 = vadd.f32 %v1428_v32, %v1427_v41 }
 0x1ce   :  { %v1430_v60 = vrot.slane %v1429_v1, 1 }
 0x1d0   :  { %v1431_v29 = vadd.f32 %v1430_v60, %v1429_v1 }
 0x1d2   :  { %v1432_v11 = vadd.f32 %v1431_v29, %v1356_v9 }
 0x1d4   :  { %1433 = vst [vmem:[#allocation3] sm:$0x1] %v1432_v11 }
 0x1db   :  { %v1644_v6 = vld [vmem:[#allocation3] sm:$0x1] }
 0x1dc   :  { %2153 = vlog2.f32 %v1644_v6 }
 0x1e6   :  { %v2154_v5 = vpop.eup %2153 }
 0x1e7   :  { %v1646_v51 = vmul.f32 0.6931472, %v2154_v5 }
 0x1e9   :  { %v1647_v37 = vadd.f32 %v1646_v51, %v1643_v10 }
 0x1eb   :  { %1648 = vst [vmem:[#allocation10] sm:$0x1] %v1647_v37 }
 0x1ec   :  { %2232 = shalt.err (!%p2229_p0)
}
 0x1ed   :  { %s2233_s2 = scalar_lea.hbm %s2984_s4, 16 }
 0x1ee   :  { %p2234_p1 = scmp.ne.s32.totalorder %s2984_s4, %s2233_s2  ;;  %p2237_p2 = scmp.lt.u32.totalorder %s2233_s2, %s2984_s4 }
 0x1f0   :  { %p2239_p3 = pnand %p2237_p2, %p2234_p1 }
 0x1f2   :  { %2242 = shalt.err (!%p2239_p3)
}
 0x1f3   :  { %1660 = dma.vmem_to_hbm [thread:$0]  %s1658_s12, 16, %s2984_s4, [#allocation7]  }
 0x1f4   :  { %2247 = dma.done.wait [#allocation7], 16  }
 0x1f5   :  { %2248 = vsyncadd [#allocation7], 4294967280 }
 0x1f6   :  { %2249 = dma.done.wait [#allocation12], 16  }
 0x1f7   :  { %2250 = vsyncadd [#allocation12], 4294967280 }
 0x1f8   :  { %1677 = vsyncpa [#allocation6], 1 }
 0x1f9   :  { %1678 = vsyncpa [#allocation9], 1 }
 0x1fa   :  { %1679 = vsyncpa [#allocation7], 1 }
 0x1fb   :  { %1680 = vsyncpa [#allocation12], 1 }

</bundles_post_ra>
